<compile_context>
chip_gen: v7x
topology: tpu7x:2x2x1
jax: 0.10.0
libtpu: 0.0.40
codegen_flags: <defaults>
</compile_context>

<pallas_src>
import functools

import jax
import jax.numpy as jnp
from jax.experimental import pallas as pl
from jax.experimental.pallas import tpu as pltpu


# ----------------------------- Pallas kernel ------------------------------ #

def strip_block_kernel(x_ref, w0_ref, b0_ref, w1_ref, b1_ref,
                       w2_ref, b2_ref, w3_ref, b3_ref, o_ref,
                       *, H, W, C, k0, ks1, ks2):
    WC = W * C
    x = x_ref[0]                                   # (H, W*C), lane-dense packed

    # Row index on the sublane axis, used to zero vertically-wrapped rows
    # (reproduces 'same' zero padding exactly).
    row = jax.lax.broadcasted_iota(jnp.int32, (H, 1), 0)

    def dw_conv(inp, w_ref, b_ref, kh, kw):
        """Depthwise 'same' cross-correlation in packed layout via rolls."""
        ph, pw = kh // 2, kw // 2
        w_all = w_ref[...]                         # (kh*kw, W*C), col mask folded
        acc = jnp.zeros((H, WC), jnp.float32)
        for i in range(kh):                        # static taps -> unrolled
            di = i - ph
            if di == 0:
                src = inp
            else:
                # Vertical shift: sublane rotation (XLU) + zero-pad row mask.
                src = pltpu.roll(inp, shift=(-di) % H, axis=0)
                valid = (row + di >= 0) & (row + di < H)
                src = jnp.where(valid, src, 0.0)
            for j in range(kw):
                dj = j - pw
                if dj == 0:
                    tap = src
                else:
                    # Horizontal shift by dj pixels == dj*C lanes (XLU).
                    tap = pltpu.roll(src, shift=(-dj * C) % WC, axis=1)
                t = i * kw + j
                acc = acc + w_all[t:t + 1] * tap   # (1,WC) * (H,WC) dense FMA
        return acc + b_ref[...]

    attn = dw_conv(x, w0_ref, b0_ref, k0, k0)        # conv0: 5x5 depthwise
    attn = dw_conv(attn, w1_ref, b1_ref, ks1, ks2)   # conv_spatial1: (k1, k2)
    attn = dw_conv(attn, w2_ref, b2_ref, ks2, ks1)   # conv_spatial2: (k2, k1)

    # conv1 (1x1 channel mixing): one MXU matmul against kron(I_W, W3^T).
    attn = jnp.dot(attn, w3_ref[...], preferred_element_type=jnp.float32)
    attn = attn + b3_ref[...]

    o_ref[0] = (x * attn).astype(o_ref.dtype)


# ------------------------- Wrapper-side packing ---------------------------- #

def _pack_dw_weight(w_oihw, W):
    """(C,1,kh,kw) depthwise weight -> (kh*kw, W*C) packed tap weights with the
    horizontal zero-padding mask folded in (weight is zero where the source
    column would fall outside the image)."""
    C, _, kh, kw = w_oihw.shape
    w = jnp.transpose(w_oihw[:, 0], (1, 2, 0))           # (kh, kw, C)
    pw = kw // 2
    wpos = jnp.arange(W)
    rows = []
    for i in range(kh):
        for j in range(kw):
            dj = j - pw
            col_ok = ((wpos + dj >= 0) & (wpos + dj < W)).astype(w.dtype)   # (W,)
            rows.append((col_ok[:, None] * w[i, j][None, :]).reshape(W * C))
    return jnp.stack(rows, axis=0)                       # (kh*kw, W*C)


def _pack_bias(b, W):
    return jnp.tile(b, W).reshape(1, -1)                 # (1, W*C), b[c] at w*C+c


def strip_block_packed(x_packed, params, k1, k2, H, W, C):
    """x_packed: (N, H, W*C) channels-minor packed layout (lane-dense)."""
    N = x_packed.shape[0]
    WC = W * C

    w0p = _pack_dw_weight(params["w0"], W)               # (25, WC)
    w1p = _pack_dw_weight(params["w1"], W)               # (k1*k2, WC)
    w2p = _pack_dw_weight(params["w2"], W)               # (k2*k1, WC)
    b0p = _pack_bias(params["b0"], W)
    b1p = _pack_bias(params["b1"], W)
    b2p = _pack_bias(params["b2"], W)
    b3p = _pack_bias(params["b3"], W)

    # 1x1 conv as block-diagonal (WC, WC) matrix: kron(I_W, W3^T).
    w3t = jnp.transpose(params["w3"][:, :, 0, 0], (1, 0))       # (Cin, Cout)
    w3big = jnp.kron(jnp.eye(W, dtype=w3t.dtype), w3t)          # (WC, WC)

    kernel = functools.partial(strip_block_kernel, H=H, W=W, C=C,
                               k0=5, ks1=k1, ks2=k2)

    def const_spec(shape):
        return pl.BlockSpec(shape, lambda n: (0,) * len(shape))

    taps = 25 + k1 * k2 + k2 * k1
    flops = 2 * N * H * W * C * (taps + C) + N * H * W * C
    bytes_accessed = 4 * (2 * N * H * WC + w0p.size + w1p.size + w2p.size
                          + w3big.size + 4 * WC)

    out = pl.pallas_call(
        kernel,
        out_shape=jax.ShapeDtypeStruct((N, H, WC), x_packed.dtype),
        grid_spec=pltpu.PrefetchScalarGridSpec(
            num_scalar_prefetch=0,
            grid=(N,),
            in_specs=[
                pl.BlockSpec((1, H, WC), lambda n: (n, 0, 0)),
                const_spec((25, WC)), const_spec((1, WC)),
                const_spec((k1 * k2, WC)), const_spec((1, WC)),
                const_spec((k2 * k1, WC)), const_spec((1, WC)),
                const_spec((WC, WC)), const_spec((1, WC)),
            ],
            out_specs=pl.BlockSpec((1, H, WC), lambda n: (n, 0, 0)),
        ),
        compiler_params=pltpu.CompilerParams(
            dimension_semantics=("parallel",)),
        cost_estimate=pl.CostEstimate(
            flops=int(flops), transcendentals=0,
            bytes_accessed=int(bytes_accessed)),
    )(x_packed, w0p, b0p, w1p, b1p, w2p, b2p, w3big, b3p)
    return out


def strip_block(x_nchw, params, k1, k2):
    """PyTorch-compatible NCHW entry point (transposes happen outside the
    kernel; use strip_block_packed directly to avoid them entirely)."""
    N, C, H, W = x_nchw.shape
    x_packed = jnp.transpose(x_nchw, (0, 2, 3, 1)).reshape(N, H, W * C)
    out = strip_block_packed(x_packed, params, k1, k2, H, W, C)
    return jnp.transpose(out.reshape(N, H, W, C), (0, 3, 1, 2))


# ------------------------- Pure-JAX reference ------------------------------ #

def ref_strip_block(x, params):
    def dw(y, w, b):
        kh, kw = w.shape[2], w.shape[3]
        out = jax.lax.conv_general_dilated(
            y, w, window_strides=(1, 1),
            padding=[(kh // 2, kh // 2), (kw // 2, kw // 2)],
            dimension_numbers=("NCHW", "OIHW", "NCHW"),
            feature_group_count=y.shape[1])
        return out + b[None, :, None, None]

    a = dw(x, params["w0"], params["b0"])
    a = dw(a, params["w1"], params["b1"])
    a = dw(a, params["w2"], params["b2"])
    a = jax.lax.conv_general_dilated(
        a, params["w3"], (1, 1), [(0, 0), (0, 0)],
        dimension_numbers=("NCHW", "OIHW", "NCHW"),
    ) + params["b3"][None, :, None, None]
    return x * a


# --------------------------------- Main ------------------------------------ #

if __name__ == "__main__":
    dim, k1, k2 = 8, 1, 7          # StripBlock(dim=8, k1=1, k2=7)
    N, H, W = 2, 16, 16            # W * dim = 128 -> fully lane-dense layout

    key = jax.random.PRNGKey(0)
    keys = jax.random.split(key, 9)

    params = {
        "w0": 0.1 * jax.random.normal(keys[0], (dim, 1, 5, 5), jnp.float32),
        "b0": 0.1 * jax.random.normal(keys[1], (dim,), jnp.float32),
        "w1": 0.1 * jax.random.normal(keys[2], (dim, 1, k1, k2), jnp.float32),
        "b1": 0.1 * jax.random.normal(keys[3], (dim,), jnp.float32),
        "w2": 0.1 * jax.random.normal(keys[4], (dim, 1, k2, k1), jnp.float32),
        "b2": 0.1 * jax.random.normal(keys[5], (dim,), jnp.float32),
        "w3": 0.1 * jax.random.normal(keys[6], (dim, dim, 1, 1), jnp.float32),
        "b3": 0.1 * jax.random.normal(keys[7], (dim,), jnp.float32),
    }
    x = jax.random.normal(keys[8], (N, dim, H, W), jnp.float32)

    out = jax.block_until_ready(strip_block(x, params, k1, k2))
    ref = jax.block_until_ready(ref_strip_block(x, params))

    assert out.shape == ref.shape and out.dtype == ref.dtype
    err = float(jnp.max(jnp.abs(out - ref)))
    assert jnp.allclose(out, ref, atol=1e-4, rtol=1e-4), err

    print("KERNEL_OK")
</pallas_src>

<mosaic_0001>
module attributes {stable_mosaic.version = 11 : i64} {
  func.func @strip_block_kernel(%arg0: i32, %arg1: memref<1x16x128xf32, #tpu.memory_space<vmem>>, %arg2: memref<25x128xf32, #tpu.memory_space<vmem>>, %arg3: memref<1x128xf32, #tpu.memory_space<vmem>>, %arg4: memref<7x128xf32, #tpu.memory_space<vmem>>, %arg5: memref<1x128xf32, #tpu.memory_space<vmem>>, %arg6: memref<7x128xf32, #tpu.memory_space<vmem>>, %arg7: memref<1x128xf32, #tpu.memory_space<vmem>>, %arg8: memref<128x128xf32, #tpu.memory_space<vmem>>, %arg9: memref<1x128xf32, #tpu.memory_space<vmem>>, %arg10: memref<1x16x128xf32, #tpu.memory_space<vmem>>) attributes {dimension_semantics = [#tpu.dimension_semantics<parallel>], iteration_bounds = array<i64: 2>, scalar_prefetch = 0 : i64, scratch_operands = 0 : i64, tpu.core_type = #tpu.core_type<tc>, window_params = [{transform_indices = @transform_0, window_bounds = array<i64: 1, 16, 128>}, {pipeline_mode = #tpu.pipeline_mode<synchronous>, transform_indices = @transform_1, window_bounds = array<i64: 25, 128>}, {pipeline_mode = #tpu.pipeline_mode<synchronous>, transform_indices = @transform_2, window_bounds = array<i64: 1, 128>}, {pipeline_mode = #tpu.pipeline_mode<synchronous>, transform_indices = @transform_3, window_bounds = array<i64: 7, 128>}, {pipeline_mode = #tpu.pipeline_mode<synchronous>, transform_indices = @transform_4, window_bounds = array<i64: 1, 128>}, {pipeline_mode = #tpu.pipeline_mode<synchronous>, transform_indices = @transform_5, window_bounds = array<i64: 7, 128>}, {pipeline_mode = #tpu.pipeline_mode<synchronous>, transform_indices = @transform_6, window_bounds = array<i64: 1, 128>}, {pipeline_mode = #tpu.pipeline_mode<synchronous>, transform_indices = @transform_7, window_bounds = array<i64: 128, 128>}, {pipeline_mode = #tpu.pipeline_mode<synchronous>, transform_indices = @transform_8, window_bounds = array<i64: 1, 128>}, {transform_indices = @transform_9, window_bounds = array<i64: 1, 16, 128>}]} {
    %c0 = arith.constant 0 : index
    %c0_0 = arith.constant 0 : index
    %c0_1 = arith.constant 0 : index
    %0 = vector.load %arg1[%c0, %c0_0, %c0_1] : memref<1x16x128xf32, #tpu.memory_space<vmem>>, vector<1x16x128xf32>
    %1 = vector.shape_cast %0 : vector<1x16x128xf32> to vector<16x128xf32>
    %2 = tpu.iota {dimensions = array<i32: 0>} : vector<16x1xi32>
    %c0_2 = arith.constant 0 : index
    %c0_3 = arith.constant 0 : index
    %3 = vector.load %arg2[%c0_2, %c0_3] : memref<25x128xf32, #tpu.memory_space<vmem>>, vector<25x128xf32>
    %cst = arith.constant 0.000000e+00 : f32
    %4 = vector.broadcast %cst : f32 to vector<16x128xf32>
    %c2_i32 = arith.constant 2 : i32
    %5 = tpu.dynamic_rotate %1 by %c2_i32 dim 0 : vector<16x128xf32>, i32 -> vector<16x128xf32>
    %c-2_i32 = arith.constant -2 : i32
    %6 = vector.broadcast %c-2_i32 : i32 to vector<16x1xi32>
    %7 = arith.addi %2, %6 : vector<16x1xi32>
    %c0_i32 = arith.constant 0 : i32
    %8 = vector.broadcast %c0_i32 : i32 to vector<16x1xi32>
    %9 = arith.cmpi sge, %7, %8 : vector<16x1xi32>
    %c-2_i32_4 = arith.constant -2 : i32
    %10 = vector.broadcast %c-2_i32_4 : i32 to vector<16x1xi32>
    %11 = arith.addi %2, %10 : vector<16x1xi32>
    %c16_i32 = arith.constant 16 : i32
    %12 = vector.broadcast %c16_i32 : i32 to vector<16x1xi32>
    %13 = arith.cmpi slt, %11, %12 : vector<16x1xi32>
    %14 = arith.andi %9, %13 : vector<16x1xi1>
    %cst_5 = arith.constant 0.000000e+00 : f32
    %15 = vector.shape_cast %14 : vector<16x1xi1> to vector<16x1xi1>
    %16 = vector.broadcast %15 : vector<16x1xi1> to vector<16x128xi1>
    %17 = vector.broadcast %cst_5 : f32 to vector<16x128xf32>
    %18 = arith.select %16, %5, %17 : vector<16x128xi1>, vector<16x128xf32>
    %c16_i32_6 = arith.constant 16 : i32
    %19 = tpu.dynamic_rotate %18 by %c16_i32_6 dim 1 : vector<16x128xf32>, i32 -> vector<16x128xf32>
    %20 = vector.extract_strided_slice %3 {offsets = [0, 0], sizes = [1, 128], strides = [1, 1]} : vector<25x128xf32> to vector<1x128xf32>
    %21 = vector.broadcast %20 : vector<1x128xf32> to vector<16x128xf32>
    %22 = arith.mulf %21, %19 : vector<16x128xf32>
    %23 = arith.addf %4, %22 : vector<16x128xf32>
    %c8_i32 = arith.constant 8 : i32
    %24 = tpu.dynamic_rotate %18 by %c8_i32 dim 1 : vector<16x128xf32>, i32 -> vector<16x128xf32>
    %25 = vector.extract_strided_slice %3 {offsets = [1, 0], sizes = [1, 128], strides = [1, 1]} : vector<25x128xf32> to vector<1x128xf32>
    %26 = vector.broadcast %25 : vector<1x128xf32> to vector<16x128xf32>
    %27 = arith.mulf %26, %24 : vector<16x128xf32>
    %28 = arith.addf %23, %27 : vector<16x128xf32>
    %29 = vector.extract_strided_slice %3 {offsets = [2, 0], sizes = [1, 128], strides = [1, 1]} : vector<25x128xf32> to vector<1x128xf32>
    %30 = vector.broadcast %29 : vector<1x128xf32> to vector<16x128xf32>
    %31 = arith.mulf %30, %18 : vector<16x128xf32>
    %32 = arith.addf %28, %31 : vector<16x128xf32>
    %c120_i32 = arith.constant 120 : i32
    %33 = tpu.dynamic_rotate %18 by %c120_i32 dim 1 : vector<16x128xf32>, i32 -> vector<16x128xf32>
    %34 = vector.extract_strided_slice %3 {offsets = [3, 0], sizes = [1, 128], strides = [1, 1]} : vector<25x128xf32> to vector<1x128xf32>
    %35 = vector.broadcast %34 : vector<1x128xf32> to vector<16x128xf32>
    %36 = arith.mulf %35, %33 : vector<16x128xf32>
    %37 = arith.addf %32, %36 : vector<16x128xf32>
    %c112_i32 = arith.constant 112 : i32
    %38 = tpu.dynamic_rotate %18 by %c112_i32 dim 1 : vector<16x128xf32>, i32 -> vector<16x128xf32>
    %39 = vector.extract_strided_slice %3 {offsets = [4, 0], sizes = [1, 128], strides = [1, 1]} : vector<25x128xf32> to vector<1x128xf32>
    %40 = vector.broadcast %39 : vector<1x128xf32> to vector<16x128xf32>
    %41 = arith.mulf %40, %38 : vector<16x128xf32>
    %42 = arith.addf %37, %41 : vector<16x128xf32>
    %c1_i32 = arith.constant 1 : i32
    %43 = tpu.dynamic_rotate %1 by %c1_i32 dim 0 : vector<16x128xf32>, i32 -> vector<16x128xf32>
    %c-1_i32 = arith.constant -1 : i32
    %44 = vector.broadcast %c-1_i32 : i32 to vector<16x1xi32>
    %45 = arith.addi %2, %44 : vector<16x1xi32>
    %c0_i32_7 = arith.constant 0 : i32
    %46 = vector.broadcast %c0_i32_7 : i32 to vector<16x1xi32>
    %47 = arith.cmpi sge, %45, %46 : vector<16x1xi32>
    %c-1_i32_8 = arith.constant -1 : i32
    %48 = vector.broadcast %c-1_i32_8 : i32 to vector<16x1xi32>
    %49 = arith.addi %2, %48 : vector<16x1xi32>
    %c16_i32_9 = arith.constant 16 : i32
    %50 = vector.broadcast %c16_i32_9 : i32 to vector<16x1xi32>
    %51 = arith.cmpi slt, %49, %50 : vector<16x1xi32>
    %52 = arith.andi %47, %51 : vector<16x1xi1>
    %cst_10 = arith.constant 0.000000e+00 : f32
    %53 = vector.shape_cast %52 : vector<16x1xi1> to vector<16x1xi1>
    %54 = vector.broadcast %53 : vector<16x1xi1> to vector<16x128xi1>
    %55 = vector.broadcast %cst_10 : f32 to vector<16x128xf32>
    %56 = arith.select %54, %43, %55 : vector<16x128xi1>, vector<16x128xf32>
    %c16_i32_11 = arith.constant 16 : i32
    %57 = tpu.dynamic_rotate %56 by %c16_i32_11 dim 1 : vector<16x128xf32>, i32 -> vector<16x128xf32>
    %58 = vector.extract_strided_slice %3 {offsets = [5, 0], sizes = [1, 128], strides = [1, 1]} : vector<25x128xf32> to vector<1x128xf32>
    %59 = vector.broadcast %58 : vector<1x128xf32> to vector<16x128xf32>
    %60 = arith.mulf %59, %57 : vector<16x128xf32>
    %61 = arith.addf %42, %60 : vector<16x128xf32>
    %c8_i32_12 = arith.constant 8 : i32
    %62 = tpu.dynamic_rotate %56 by %c8_i32_12 dim 1 : vector<16x128xf32>, i32 -> vector<16x128xf32>
    %63 = vector.extract_strided_slice %3 {offsets = [6, 0], sizes = [1, 128], strides = [1, 1]} : vector<25x128xf32> to vector<1x128xf32>
    %64 = vector.broadcast %63 : vector<1x128xf32> to vector<16x128xf32>
    %65 = arith.mulf %64, %62 : vector<16x128xf32>
    %66 = arith.addf %61, %65 : vector<16x128xf32>
    %67 = vector.extract_strided_slice %3 {offsets = [7, 0], sizes = [1, 128], strides = [1, 1]} : vector<25x128xf32> to vector<1x128xf32>
    %68 = vector.broadcast %67 : vector<1x128xf32> to vector<16x128xf32>
    %69 = arith.mulf %68, %56 : vector<16x128xf32>
    %70 = arith.addf %66, %69 : vector<16x128xf32>
    %c120_i32_13 = arith.constant 120 : i32
    %71 = tpu.dynamic_rotate %56 by %c120_i32_13 dim 1 : vector<16x128xf32>, i32 -> vector<16x128xf32>
    %72 = vector.extract_strided_slice %3 {offsets = [8, 0], sizes = [1, 128], strides = [1, 1]} : vector<25x128xf32> to vector<1x128xf32>
    %73 = vector.broadcast %72 : vector<1x128xf32> to vector<16x128xf32>
    %74 = arith.mulf %73, %71 : vector<16x128xf32>
    %75 = arith.addf %70, %74 : vector<16x128xf32>
    %c112_i32_14 = arith.constant 112 : i32
    %76 = tpu.dynamic_rotate %56 by %c112_i32_14 dim 1 : vector<16x128xf32>, i32 -> vector<16x128xf32>
    %77 = vector.extract_strided_slice %3 {offsets = [9, 0], sizes = [1, 128], strides = [1, 1]} : vector<25x128xf32> to vector<1x128xf32>
    %78 = vector.broadcast %77 : vector<1x128xf32> to vector<16x128xf32>
    %79 = arith.mulf %78, %76 : vector<16x128xf32>
    %80 = arith.addf %75, %79 : vector<16x128xf32>
    %c16_i32_15 = arith.constant 16 : i32
    %81 = tpu.dynamic_rotate %1 by %c16_i32_15 dim 1 : vector<16x128xf32>, i32 -> vector<16x128xf32>
    %82 = vector.extract_strided_slice %3 {offsets = [10, 0], sizes = [1, 128], strides = [1, 1]} : vector<25x128xf32> to vector<1x128xf32>
    %83 = vector.broadcast %82 : vector<1x128xf32> to vector<16x128xf32>
    %84 = arith.mulf %83, %81 : vector<16x128xf32>
    %85 = arith.addf %80, %84 : vector<16x128xf32>
    %c8_i32_16 = arith.constant 8 : i32
    %86 = tpu.dynamic_rotate %1 by %c8_i32_16 dim 1 : vector<16x128xf32>, i32 -> vector<16x128xf32>
    %87 = vector.extract_strided_slice %3 {offsets = [11, 0], sizes = [1, 128], strides = [1, 1]} : vector<25x128xf32> to vector<1x128xf32>
    %88 = vector.broadcast %87 : vector<1x128xf32> to vector<16x128xf32>
    %89 = arith.mulf %88, %86 : vector<16x128xf32>
    %90 = arith.addf %85, %89 : vector<16x128xf32>
    %91 = vector.extract_strided_slice %3 {offsets = [12, 0], sizes = [1, 128], strides = [1, 1]} : vector<25x128xf32> to vector<1x128xf32>
    %92 = vector.broadcast %91 : vector<1x128xf32> to vector<16x128xf32>
    %93 = arith.mulf %92, %1 : vector<16x128xf32>
    %94 = arith.addf %90, %93 : vector<16x128xf32>
    %c120_i32_17 = arith.constant 120 : i32
    %95 = tpu.dynamic_rotate %1 by %c120_i32_17 dim 1 : vector<16x128xf32>, i32 -> vector<16x128xf32>
    %96 = vector.extract_strided_slice %3 {offsets = [13, 0], sizes = [1, 128], strides = [1, 1]} : vector<25x128xf32> to vector<1x128xf32>
    %97 = vector.broadcast %96 : vector<1x128xf32> to vector<16x128xf32>
    %98 = arith.mulf %97, %95 : vector<16x128xf32>
    %99 = arith.addf %94, %98 : vector<16x128xf32>
    %c112_i32_18 = arith.constant 112 : i32
    %100 = tpu.dynamic_rotate %1 by %c112_i32_18 dim 1 : vector<16x128xf32>, i32 -> vector<16x128xf32>
    %101 = vector.extract_strided_slice %3 {offsets = [14, 0], sizes = [1, 128], strides = [1, 1]} : vector<25x128xf32> to vector<1x128xf32>
    %102 = vector.broadcast %101 : vector<1x128xf32> to vector<16x128xf32>
    %103 = arith.mulf %102, %100 : vector<16x128xf32>
    %104 = arith.addf %99, %103 : vector<16x128xf32>
    %c15_i32 = arith.constant 15 : i32
    %105 = tpu.dynamic_rotate %1 by %c15_i32 dim 0 : vector<16x128xf32>, i32 -> vector<16x128xf32>
    %c1_i32_19 = arith.constant 1 : i32
    %106 = vector.broadcast %c1_i32_19 : i32 to vector<16x1xi32>
    %107 = arith.addi %2, %106 : vector<16x1xi32>
    %c0_i32_20 = arith.constant 0 : i32
    %108 = vector.broadcast %c0_i32_20 : i32 to vector<16x1xi32>
    %109 = arith.cmpi sge, %107, %108 : vector<16x1xi32>
    %c1_i32_21 = arith.constant 1 : i32
    %110 = vector.broadcast %c1_i32_21 : i32 to vector<16x1xi32>
    %111 = arith.addi %2, %110 : vector<16x1xi32>
    %c16_i32_22 = arith.constant 16 : i32
    %112 = vector.broadcast %c16_i32_22 : i32 to vector<16x1xi32>
    %113 = arith.cmpi slt, %111, %112 : vector<16x1xi32>
    %114 = arith.andi %109, %113 : vector<16x1xi1>
    %cst_23 = arith.constant 0.000000e+00 : f32
    %115 = vector.shape_cast %114 : vector<16x1xi1> to vector<16x1xi1>
    %116 = vector.broadcast %115 : vector<16x1xi1> to vector<16x128xi1>
    %117 = vector.broadcast %cst_23 : f32 to vector<16x128xf32>
    %118 = arith.select %116, %105, %117 : vector<16x128xi1>, vector<16x128xf32>
    %c16_i32_24 = arith.constant 16 : i32
    %119 = tpu.dynamic_rotate %118 by %c16_i32_24 dim 1 : vector<16x128xf32>, i32 -> vector<16x128xf32>
    %120 = vector.extract_strided_slice %3 {offsets = [15, 0], sizes = [1, 128], strides = [1, 1]} : vector<25x128xf32> to vector<1x128xf32>
    %121 = vector.broadcast %120 : vector<1x128xf32> to vector<16x128xf32>
    %122 = arith.mulf %121, %119 : vector<16x128xf32>
    %123 = arith.addf %104, %122 : vector<16x128xf32>
    %c8_i32_25 = arith.constant 8 : i32
    %124 = tpu.dynamic_rotate %118 by %c8_i32_25 dim 1 : vector<16x128xf32>, i32 -> vector<16x128xf32>
    %125 = vector.extract_strided_slice %3 {offsets = [16, 0], sizes = [1, 128], strides = [1, 1]} : vector<25x128xf32> to vector<1x128xf32>
    %126 = vector.broadcast %125 : vector<1x128xf32> to vector<16x128xf32>
    %127 = arith.mulf %126, %124 : vector<16x128xf32>
    %128 = arith.addf %123, %127 : vector<16x128xf32>
    %129 = vector.extract_strided_slice %3 {offsets = [17, 0], sizes = [1, 128], strides = [1, 1]} : vector<25x128xf32> to vector<1x128xf32>
    %130 = vector.broadcast %129 : vector<1x128xf32> to vector<16x128xf32>
    %131 = arith.mulf %130, %118 : vector<16x128xf32>
    %132 = arith.addf %128, %131 : vector<16x128xf32>
    %c120_i32_26 = arith.constant 120 : i32
    %133 = tpu.dynamic_rotate %118 by %c120_i32_26 dim 1 : vector<16x128xf32>, i32 -> vector<16x128xf32>
    %134 = vector.extract_strided_slice %3 {offsets = [18, 0], sizes = [1, 128], strides = [1, 1]} : vector<25x128xf32> to vector<1x128xf32>
    %135 = vector.broadcast %134 : vector<1x128xf32> to vector<16x128xf32>
    %136 = arith.mulf %135, %133 : vector<16x128xf32>
    %137 = arith.addf %132, %136 : vector<16x128xf32>
    %c112_i32_27 = arith.constant 112 : i32
    %138 = tpu.dynamic_rotate %118 by %c112_i32_27 dim 1 : vector<16x128xf32>, i32 -> vector<16x128xf32>
    %139 = vector.extract_strided_slice %3 {offsets = [19, 0], sizes = [1, 128], strides = [1, 1]} : vector<25x128xf32> to vector<1x128xf32>
    %140 = vector.broadcast %139 : vector<1x128xf32> to vector<16x128xf32>
    %141 = arith.mulf %140, %138 : vector<16x128xf32>
    %142 = arith.addf %137, %141 : vector<16x128xf32>
    %c14_i32 = arith.constant 14 : i32
    %143 = tpu.dynamic_rotate %1 by %c14_i32 dim 0 : vector<16x128xf32>, i32 -> vector<16x128xf32>
    %c2_i32_28 = arith.constant 2 : i32
    %144 = vector.broadcast %c2_i32_28 : i32 to vector<16x1xi32>
    %145 = arith.addi %2, %144 : vector<16x1xi32>
    %c0_i32_29 = arith.constant 0 : i32
    %146 = vector.broadcast %c0_i32_29 : i32 to vector<16x1xi32>
    %147 = arith.cmpi sge, %145, %146 : vector<16x1xi32>
    %c2_i32_30 = arith.constant 2 : i32
    %148 = vector.broadcast %c2_i32_30 : i32 to vector<16x1xi32>
    %149 = arith.addi %2, %148 : vector<16x1xi32>
    %c16_i32_31 = arith.constant 16 : i32
    %150 = vector.broadcast %c16_i32_31 : i32 to vector<16x1xi32>
    %151 = arith.cmpi slt, %149, %150 : vector<16x1xi32>
    %152 = arith.andi %147, %151 : vector<16x1xi1>
    %cst_32 = arith.constant 0.000000e+00 : f32
    %153 = vector.shape_cast %152 : vector<16x1xi1> to vector<16x1xi1>
    %154 = vector.broadcast %153 : vector<16x1xi1> to vector<16x128xi1>
    %155 = vector.broadcast %cst_32 : f32 to vector<16x128xf32>
    %156 = arith.select %154, %143, %155 : vector<16x128xi1>, vector<16x128xf32>
    %c16_i32_33 = arith.constant 16 : i32
    %157 = tpu.dynamic_rotate %156 by %c16_i32_33 dim 1 : vector<16x128xf32>, i32 -> vector<16x128xf32>
    %158 = vector.extract_strided_slice %3 {offsets = [20, 0], sizes = [1, 128], strides = [1, 1]} : vector<25x128xf32> to vector<1x128xf32>
    %159 = vector.broadcast %158 : vector<1x128xf32> to vector<16x128xf32>
    %160 = arith.mulf %159, %157 : vector<16x128xf32>
    %161 = arith.addf %142, %160 : vector<16x128xf32>
    %c8_i32_34 = arith.constant 8 : i32
    %162 = tpu.dynamic_rotate %156 by %c8_i32_34 dim 1 : vector<16x128xf32>, i32 -> vector<16x128xf32>
    %163 = vector.extract_strided_slice %3 {offsets = [21, 0], sizes = [1, 128], strides = [1, 1]} : vector<25x128xf32> to vector<1x128xf32>
    %164 = vector.broadcast %163 : vector<1x128xf32> to vector<16x128xf32>
    %165 = arith.mulf %164, %162 : vector<16x128xf32>
    %166 = arith.addf %161, %165 : vector<16x128xf32>
    %167 = vector.extract_strided_slice %3 {offsets = [22, 0], sizes = [1, 128], strides = [1, 1]} : vector<25x128xf32> to vector<1x128xf32>
    %168 = vector.broadcast %167 : vector<1x128xf32> to vector<16x128xf32>
    %169 = arith.mulf %168, %156 : vector<16x128xf32>
    %170 = arith.addf %166, %169 : vector<16x128xf32>
    %c120_i32_35 = arith.constant 120 : i32
    %171 = tpu.dynamic_rotate %156 by %c120_i32_35 dim 1 : vector<16x128xf32>, i32 -> vector<16x128xf32>
    %172 = vector.extract_strided_slice %3 {offsets = [23, 0], sizes = [1, 128], strides = [1, 1]} : vector<25x128xf32> to vector<1x128xf32>
    %173 = vector.broadcast %172 : vector<1x128xf32> to vector<16x128xf32>
    %174 = arith.mulf %173, %171 : vector<16x128xf32>
    %175 = arith.addf %170, %174 : vector<16x128xf32>
    %c112_i32_36 = arith.constant 112 : i32
    %176 = tpu.dynamic_rotate %156 by %c112_i32_36 dim 1 : vector<16x128xf32>, i32 -> vector<16x128xf32>
    %177 = vector.extract_strided_slice %3 {offsets = [24, 0], sizes = [1, 128], strides = [1, 1]} : vector<25x128xf32> to vector<1x128xf32>
    %178 = vector.broadcast %177 : vector<1x128xf32> to vector<16x128xf32>
    %179 = arith.mulf %178, %176 : vector<16x128xf32>
    %180 = arith.addf %175, %179 : vector<16x128xf32>
    %c0_37 = arith.constant 0 : index
    %c0_38 = arith.constant 0 : index
    %181 = vector.load %arg3[%c0_37, %c0_38] : memref<1x128xf32, #tpu.memory_space<vmem>>, vector<1x128xf32>
    %182 = vector.broadcast %181 : vector<1x128xf32> to vector<16x128xf32>
    %183 = arith.addf %180, %182 : vector<16x128xf32>
    %c0_39 = arith.constant 0 : index
    %c0_40 = arith.constant 0 : index
    %184 = vector.load %arg4[%c0_39, %c0_40] : memref<7x128xf32, #tpu.memory_space<vmem>>, vector<7x128xf32>
    %cst_41 = arith.constant 0.000000e+00 : f32
    %185 = vector.broadcast %cst_41 : f32 to vector<16x128xf32>
    %c24_i32 = arith.constant 24 : i32
    %186 = tpu.dynamic_rotate %183 by %c24_i32 dim 1 : vector<16x128xf32>, i32 -> vector<16x128xf32>
    %187 = vector.extract_strided_slice %184 {offsets = [0, 0], sizes = [1, 128], strides = [1, 1]} : vector<7x128xf32> to vector<1x128xf32>
    %188 = vector.broadcast %187 : vector<1x128xf32> to vector<16x128xf32>
    %189 = arith.mulf %188, %186 : vector<16x128xf32>
    %190 = arith.addf %185, %189 : vector<16x128xf32>
    %c16_i32_42 = arith.constant 16 : i32
    %191 = tpu.dynamic_rotate %183 by %c16_i32_42 dim 1 : vector<16x128xf32>, i32 -> vector<16x128xf32>
    %192 = vector.extract_strided_slice %184 {offsets = [1, 0], sizes = [1, 128], strides = [1, 1]} : vector<7x128xf32> to vector<1x128xf32>
    %193 = vector.broadcast %192 : vector<1x128xf32> to vector<16x128xf32>
    %194 = arith.mulf %193, %191 : vector<16x128xf32>
    %195 = arith.addf %190, %194 : vector<16x128xf32>
    %c8_i32_43 = arith.constant 8 : i32
    %196 = tpu.dynamic_rotate %183 by %c8_i32_43 dim 1 : vector<16x128xf32>, i32 -> vector<16x128xf32>
    %197 = vector.extract_strided_slice %184 {offsets = [2, 0], sizes = [1, 128], strides = [1, 1]} : vector<7x128xf32> to vector<1x128xf32>
    %198 = vector.broadcast %197 : vector<1x128xf32> to vector<16x128xf32>
    %199 = arith.mulf %198, %196 : vector<16x128xf32>
    %200 = arith.addf %195, %199 : vector<16x128xf32>
    %201 = vector.extract_strided_slice %184 {offsets = [3, 0], sizes = [1, 128], strides = [1, 1]} : vector<7x128xf32> to vector<1x128xf32>
    %202 = vector.broadcast %201 : vector<1x128xf32> to vector<16x128xf32>
    %203 = arith.mulf %202, %183 : vector<16x128xf32>
    %204 = arith.addf %200, %203 : vector<16x128xf32>
    %c120_i32_44 = arith.constant 120 : i32
    %205 = tpu.dynamic_rotate %183 by %c120_i32_44 dim 1 : vector<16x128xf32>, i32 -> vector<16x128xf32>
    %206 = vector.extract_strided_slice %184 {offsets = [4, 0], sizes = [1, 128], strides = [1, 1]} : vector<7x128xf32> to vector<1x128xf32>
    %207 = vector.broadcast %206 : vector<1x128xf32> to vector<16x128xf32>
    %208 = arith.mulf %207, %205 : vector<16x128xf32>
    %209 = arith.addf %204, %208 : vector<16x128xf32>
    %c112_i32_45 = arith.constant 112 : i32
    %210 = tpu.dynamic_rotate %183 by %c112_i32_45 dim 1 : vector<16x128xf32>, i32 -> vector<16x128xf32>
    %211 = vector.extract_strided_slice %184 {offsets = [5, 0], sizes = [1, 128], strides = [1, 1]} : vector<7x128xf32> to vector<1x128xf32>
    %212 = vector.broadcast %211 : vector<1x128xf32> to vector<16x128xf32>
    %213 = arith.mulf %212, %210 : vector<16x128xf32>
    %214 = arith.addf %209, %213 : vector<16x128xf32>
    %c104_i32 = arith.constant 104 : i32
    %215 = tpu.dynamic_rotate %183 by %c104_i32 dim 1 : vector<16x128xf32>, i32 -> vector<16x128xf32>
    %216 = vector.extract_strided_slice %184 {offsets = [6, 0], sizes = [1, 128], strides = [1, 1]} : vector<7x128xf32> to vector<1x128xf32>
    %217 = vector.broadcast %216 : vector<1x128xf32> to vector<16x128xf32>
    %218 = arith.mulf %217, %215 : vector<16x128xf32>
    %219 = arith.addf %214, %218 : vector<16x128xf32>
    %c0_46 = arith.constant 0 : index
    %c0_47 = arith.constant 0 : index
    %220 = vector.load %arg5[%c0_46, %c0_47] : memref<1x128xf32, #tpu.memory_space<vmem>>, vector<1x128xf32>
    %221 = vector.broadcast %220 : vector<1x128xf32> to vector<16x128xf32>
    %222 = arith.addf %219, %221 : vector<16x128xf32>
    %c0_48 = arith.constant 0 : index
    %c0_49 = arith.constant 0 : index
    %223 = vector.load %arg6[%c0_48, %c0_49] : memref<7x128xf32, #tpu.memory_space<vmem>>, vector<7x128xf32>
    %cst_50 = arith.constant 0.000000e+00 : f32
    %224 = vector.broadcast %cst_50 : f32 to vector<16x128xf32>
    %c3_i32 = arith.constant 3 : i32
    %225 = tpu.dynamic_rotate %222 by %c3_i32 dim 0 : vector<16x128xf32>, i32 -> vector<16x128xf32>
    %c-3_i32 = arith.constant -3 : i32
    %226 = vector.broadcast %c-3_i32 : i32 to vector<16x1xi32>
    %227 = arith.addi %2, %226 : vector<16x1xi32>
    %c0_i32_51 = arith.constant 0 : i32
    %228 = vector.broadcast %c0_i32_51 : i32 to vector<16x1xi32>
    %229 = arith.cmpi sge, %227, %228 : vector<16x1xi32>
    %c-3_i32_52 = arith.constant -3 : i32
    %230 = vector.broadcast %c-3_i32_52 : i32 to vector<16x1xi32>
    %231 = arith.addi %2, %230 : vector<16x1xi32>
    %c16_i32_53 = arith.constant 16 : i32
    %232 = vector.broadcast %c16_i32_53 : i32 to vector<16x1xi32>
    %233 = arith.cmpi slt, %231, %232 : vector<16x1xi32>
    %234 = arith.andi %229, %233 : vector<16x1xi1>
    %cst_54 = arith.constant 0.000000e+00 : f32
    %235 = vector.shape_cast %234 : vector<16x1xi1> to vector<16x1xi1>
    %236 = vector.broadcast %235 : vector<16x1xi1> to vector<16x128xi1>
    %237 = vector.broadcast %cst_54 : f32 to vector<16x128xf32>
    %238 = arith.select %236, %225, %237 : vector<16x128xi1>, vector<16x128xf32>
    %239 = vector.extract_strided_slice %223 {offsets = [0, 0], sizes = [1, 128], strides = [1, 1]} : vector<7x128xf32> to vector<1x128xf32>
    %240 = vector.broadcast %239 : vector<1x128xf32> to vector<16x128xf32>
    %241 = arith.mulf %240, %238 : vector<16x128xf32>
    %242 = arith.addf %224, %241 : vector<16x128xf32>
    %c2_i32_55 = arith.constant 2 : i32
    %243 = tpu.dynamic_rotate %222 by %c2_i32_55 dim 0 : vector<16x128xf32>, i32 -> vector<16x128xf32>
    %c-2_i32_56 = arith.constant -2 : i32
    %244 = vector.broadcast %c-2_i32_56 : i32 to vector<16x1xi32>
    %245 = arith.addi %2, %244 : vector<16x1xi32>
    %c0_i32_57 = arith.constant 0 : i32
    %246 = vector.broadcast %c0_i32_57 : i32 to vector<16x1xi32>
    %247 = arith.cmpi sge, %245, %246 : vector<16x1xi32>
    %c-2_i32_58 = arith.constant -2 : i32
    %248 = vector.broadcast %c-2_i32_58 : i32 to vector<16x1xi32>
    %249 = arith.addi %2, %248 : vector<16x1xi32>
    %c16_i32_59 = arith.constant 16 : i32
    %250 = vector.broadcast %c16_i32_59 : i32 to vector<16x1xi32>
    %251 = arith.cmpi slt, %249, %250 : vector<16x1xi32>
    %252 = arith.andi %247, %251 : vector<16x1xi1>
    %cst_60 = arith.constant 0.000000e+00 : f32
    %253 = vector.shape_cast %252 : vector<16x1xi1> to vector<16x1xi1>
    %254 = vector.broadcast %253 : vector<16x1xi1> to vector<16x128xi1>
    %255 = vector.broadcast %cst_60 : f32 to vector<16x128xf32>
    %256 = arith.select %254, %243, %255 : vector<16x128xi1>, vector<16x128xf32>
    %257 = vector.extract_strided_slice %223 {offsets = [1, 0], sizes = [1, 128], strides = [1, 1]} : vector<7x128xf32> to vector<1x128xf32>
    %258 = vector.broadcast %257 : vector<1x128xf32> to vector<16x128xf32>
    %259 = arith.mulf %258, %256 : vector<16x128xf32>
    %260 = arith.addf %242, %259 : vector<16x128xf32>
    %c1_i32_61 = arith.constant 1 : i32
    %261 = tpu.dynamic_rotate %222 by %c1_i32_61 dim 0 : vector<16x128xf32>, i32 -> vector<16x128xf32>
    %c-1_i32_62 = arith.constant -1 : i32
    %262 = vector.broadcast %c-1_i32_62 : i32 to vector<16x1xi32>
    %263 = arith.addi %2, %262 : vector<16x1xi32>
    %c0_i32_63 = arith.constant 0 : i32
    %264 = vector.broadcast %c0_i32_63 : i32 to vector<16x1xi32>
    %265 = arith.cmpi sge, %263, %264 : vector<16x1xi32>
    %c-1_i32_64 = arith.constant -1 : i32
    %266 = vector.broadcast %c-1_i32_64 : i32 to vector<16x1xi32>
    %267 = arith.addi %2, %266 : vector<16x1xi32>
    %c16_i32_65 = arith.constant 16 : i32
    %268 = vector.broadcast %c16_i32_65 : i32 to vector<16x1xi32>
    %269 = arith.cmpi slt, %267, %268 : vector<16x1xi32>
    %270 = arith.andi %265, %269 : vector<16x1xi1>
    %cst_66 = arith.constant 0.000000e+00 : f32
    %271 = vector.shape_cast %270 : vector<16x1xi1> to vector<16x1xi1>
    %272 = vector.broadcast %271 : vector<16x1xi1> to vector<16x128xi1>
    %273 = vector.broadcast %cst_66 : f32 to vector<16x128xf32>
    %274 = arith.select %272, %261, %273 : vector<16x128xi1>, vector<16x128xf32>
    %275 = vector.extract_strided_slice %223 {offsets = [2, 0], sizes = [1, 128], strides = [1, 1]} : vector<7x128xf32> to vector<1x128xf32>
    %276 = vector.broadcast %275 : vector<1x128xf32> to vector<16x128xf32>
    %277 = arith.mulf %276, %274 : vector<16x128xf32>
    %278 = arith.addf %260, %277 : vector<16x128xf32>
    %279 = vector.extract_strided_slice %223 {offsets = [3, 0], sizes = [1, 128], strides = [1, 1]} : vector<7x128xf32> to vector<1x128xf32>
    %280 = vector.broadcast %279 : vector<1x128xf32> to vector<16x128xf32>
    %281 = arith.mulf %280, %222 : vector<16x128xf32>
    %282 = arith.addf %278, %281 : vector<16x128xf32>
    %c15_i32_67 = arith.constant 15 : i32
    %283 = tpu.dynamic_rotate %222 by %c15_i32_67 dim 0 : vector<16x128xf32>, i32 -> vector<16x128xf32>
    %c1_i32_68 = arith.constant 1 : i32
    %284 = vector.broadcast %c1_i32_68 : i32 to vector<16x1xi32>
    %285 = arith.addi %2, %284 : vector<16x1xi32>
    %c0_i32_69 = arith.constant 0 : i32
    %286 = vector.broadcast %c0_i32_69 : i32 to vector<16x1xi32>
    %287 = arith.cmpi sge, %285, %286 : vector<16x1xi32>
    %c1_i32_70 = arith.constant 1 : i32
    %288 = vector.broadcast %c1_i32_70 : i32 to vector<16x1xi32>
    %289 = arith.addi %2, %288 : vector<16x1xi32>
    %c16_i32_71 = arith.constant 16 : i32
    %290 = vector.broadcast %c16_i32_71 : i32 to vector<16x1xi32>
    %291 = arith.cmpi slt, %289, %290 : vector<16x1xi32>
    %292 = arith.andi %287, %291 : vector<16x1xi1>
    %cst_72 = arith.constant 0.000000e+00 : f32
    %293 = vector.shape_cast %292 : vector<16x1xi1> to vector<16x1xi1>
    %294 = vector.broadcast %293 : vector<16x1xi1> to vector<16x128xi1>
    %295 = vector.broadcast %cst_72 : f32 to vector<16x128xf32>
    %296 = arith.select %294, %283, %295 : vector<16x128xi1>, vector<16x128xf32>
    %297 = vector.extract_strided_slice %223 {offsets = [4, 0], sizes = [1, 128], strides = [1, 1]} : vector<7x128xf32> to vector<1x128xf32>
    %298 = vector.broadcast %297 : vector<1x128xf32> to vector<16x128xf32>
    %299 = arith.mulf %298, %296 : vector<16x128xf32>
    %300 = arith.addf %282, %299 : vector<16x128xf32>
    %c14_i32_73 = arith.constant 14 : i32
    %301 = tpu.dynamic_rotate %222 by %c14_i32_73 dim 0 : vector<16x128xf32>, i32 -> vector<16x128xf32>
    %c2_i32_74 = arith.constant 2 : i32
    %302 = vector.broadcast %c2_i32_74 : i32 to vector<16x1xi32>
    %303 = arith.addi %2, %302 : vector<16x1xi32>
    %c0_i32_75 = arith.constant 0 : i32
    %304 = vector.broadcast %c0_i32_75 : i32 to vector<16x1xi32>
    %305 = arith.cmpi sge, %303, %304 : vector<16x1xi32>
    %c2_i32_76 = arith.constant 2 : i32
    %306 = vector.broadcast %c2_i32_76 : i32 to vector<16x1xi32>
    %307 = arith.addi %2, %306 : vector<16x1xi32>
    %c16_i32_77 = arith.constant 16 : i32
    %308 = vector.broadcast %c16_i32_77 : i32 to vector<16x1xi32>
    %309 = arith.cmpi slt, %307, %308 : vector<16x1xi32>
    %310 = arith.andi %305, %309 : vector<16x1xi1>
    %cst_78 = arith.constant 0.000000e+00 : f32
    %311 = vector.shape_cast %310 : vector<16x1xi1> to vector<16x1xi1>
    %312 = vector.broadcast %311 : vector<16x1xi1> to vector<16x128xi1>
    %313 = vector.broadcast %cst_78 : f32 to vector<16x128xf32>
    %314 = arith.select %312, %301, %313 : vector<16x128xi1>, vector<16x128xf32>
    %315 = vector.extract_strided_slice %223 {offsets = [5, 0], sizes = [1, 128], strides = [1, 1]} : vector<7x128xf32> to vector<1x128xf32>
    %316 = vector.broadcast %315 : vector<1x128xf32> to vector<16x128xf32>
    %317 = arith.mulf %316, %314 : vector<16x128xf32>
    %318 = arith.addf %300, %317 : vector<16x128xf32>
    %c13_i32 = arith.constant 13 : i32
    %319 = tpu.dynamic_rotate %222 by %c13_i32 dim 0 : vector<16x128xf32>, i32 -> vector<16x128xf32>
    %c3_i32_79 = arith.constant 3 : i32
    %320 = vector.broadcast %c3_i32_79 : i32 to vector<16x1xi32>
    %321 = arith.addi %2, %320 : vector<16x1xi32>
    %c0_i32_80 = arith.constant 0 : i32
    %322 = vector.broadcast %c0_i32_80 : i32 to vector<16x1xi32>
    %323 = arith.cmpi sge, %321, %322 : vector<16x1xi32>
    %c3_i32_81 = arith.constant 3 : i32
    %324 = vector.broadcast %c3_i32_81 : i32 to vector<16x1xi32>
    %325 = arith.addi %2, %324 : vector<16x1xi32>
    %c16_i32_82 = arith.constant 16 : i32
    %326 = vector.broadcast %c16_i32_82 : i32 to vector<16x1xi32>
    %327 = arith.cmpi slt, %325, %326 : vector<16x1xi32>
    %328 = arith.andi %323, %327 : vector<16x1xi1>
    %cst_83 = arith.constant 0.000000e+00 : f32
    %329 = vector.shape_cast %328 : vector<16x1xi1> to vector<16x1xi1>
    %330 = vector.broadcast %329 : vector<16x1xi1> to vector<16x128xi1>
    %331 = vector.broadcast %cst_83 : f32 to vector<16x128xf32>
    %332 = arith.select %330, %319, %331 : vector<16x128xi1>, vector<16x128xf32>
    %333 = vector.extract_strided_slice %223 {offsets = [6, 0], sizes = [1, 128], strides = [1, 1]} : vector<7x128xf32> to vector<1x128xf32>
    %334 = vector.broadcast %333 : vector<1x128xf32> to vector<16x128xf32>
    %335 = arith.mulf %334, %332 : vector<16x128xf32>
    %336 = arith.addf %318, %335 : vector<16x128xf32>
    %c0_84 = arith.constant 0 : index
    %c0_85 = arith.constant 0 : index
    %337 = vector.load %arg7[%c0_84, %c0_85] : memref<1x128xf32, #tpu.memory_space<vmem>>, vector<1x128xf32>
    %338 = vector.broadcast %337 : vector<1x128xf32> to vector<16x128xf32>
    %339 = arith.addf %336, %338 : vector<16x128xf32>
    %c0_86 = arith.constant 0 : index
    %c0_87 = arith.constant 0 : index
    %340 = vector.load %arg8[%c0_86, %c0_87] : memref<128x128xf32, #tpu.memory_space<vmem>>, vector<128x128xf32>
    %cst_88 = arith.constant dense<0.000000e+00> : vector<16x128xf32>
    %341 = tpu.matmul %339, %340, %cst_88 {dimension_numbers = #tpu.dot_dimension_numbers<[1], [0], [0], [1], [0, 0, 1, 1], [], []>} : vector<16x128xf32>, vector<128x128xf32>, vector<16x128xf32> -> vector<16x128xf32>
    %c0_89 = arith.constant 0 : index
    %c0_90 = arith.constant 0 : index
    %342 = vector.load %arg9[%c0_89, %c0_90] : memref<1x128xf32, #tpu.memory_space<vmem>>, vector<1x128xf32>
    %343 = vector.broadcast %342 : vector<1x128xf32> to vector<16x128xf32>
    %344 = arith.addf %341, %343 : vector<16x128xf32>
    %345 = arith.mulf %1, %344 : vector<16x128xf32>
    %c0_91 = arith.constant 0 : index
    %c0_92 = arith.constant 0 : index
    %c0_93 = arith.constant 0 : index
    %346 = vector.load %arg10[%c0_91, %c0_92, %c0_93] : memref<1x16x128xf32, #tpu.memory_space<vmem>>, vector<1x16x128xf32>
    %347 = vector.shape_cast %346 : vector<1x16x128xf32> to vector<16x128xf32>
    %348 = vector.shape_cast %345 : vector<16x128xf32> to vector<1x16x128xf32>
    tpu.vector_store %arg10[%c0_91, %c0_92, %c0_93], %348 {strides = array<i32>} : memref<1x16x128xf32, #tpu.memory_space<vmem>>, vector<1x16x128xf32>,
    return
  }
  func.func @transform_0(%arg0: i32) -> (i32, i32, i32) {
    %c0_i32 = arith.constant 0 : i32
    %c0_i32_0 = arith.constant 0 : i32
    %c0_i32_1 = arith.constant 0 : i32
    return %arg0, %c0_i32, %c0_i32_0 : i32, i32, i32
  }
  func.func @transform_1(%arg0: i32) -> (i32, i32) {
    %c0_i32 = arith.constant 0 : i32
    %c0_i32_0 = arith.constant 0 : i32
    %c0_i32_1 = arith.constant 0 : i32
    return %c0_i32, %c0_i32_0 : i32, i32
  }
  func.func @transform_2(%arg0: i32) -> (i32, i32) {
    %c0_i32 = arith.constant 0 : i32
    %c0_i32_0 = arith.constant 0 : i32
    %c0_i32_1 = arith.constant 0 : i32
    return %c0_i32, %c0_i32_0 : i32, i32
  }
  func.func @transform_3(%arg0: i32) -> (i32, i32) {
    %c0_i32 = arith.constant 0 : i32
    %c0_i32_0 = arith.constant 0 : i32
    %c0_i32_1 = arith.constant 0 : i32
    return %c0_i32, %c0_i32_0 : i32, i32
  }
  func.func @transform_4(%arg0: i32) -> (i32, i32) {
    %c0_i32 = arith.constant 0 : i32
    %c0_i32_0 = arith.constant 0 : i32
    %c0_i32_1 = arith.constant 0 : i32
    return %c0_i32, %c0_i32_0 : i32, i32
  }
  func.func @transform_5(%arg0: i32) -> (i32, i32) {
    %c0_i32 = arith.constant 0 : i32
    %c0_i32_0 = arith.constant 0 : i32
    %c0_i32_1 = arith.constant 0 : i32
    return %c0_i32, %c0_i32_0 : i32, i32
  }
  func.func @transform_6(%arg0: i32) -> (i32, i32) {
    %c0_i32 = arith.constant 0 : i32
    %c0_i32_0 = arith.constant 0 : i32
    %c0_i32_1 = arith.constant 0 : i32
    return %c0_i32, %c0_i32_0 : i32, i32
  }
  func.func @transform_7(%arg0: i32) -> (i32, i32) {
    %c0_i32 = arith.constant 0 : i32
    %c0_i32_0 = arith.constant 0 : i32
    %c0_i32_1 = arith.constant 0 : i32
    return %c0_i32, %c0_i32_0 : i32, i32
  }
  func.func @transform_8(%arg0: i32) -> (i32, i32) {
    %c0_i32 = arith.constant 0 : i32
    %c0_i32_0 = arith.constant 0 : i32
    %c0_i32_1 = arith.constant 0 : i32
    return %c0_i32, %c0_i32_0 : i32, i32
  }
  func.func @transform_9(%arg0: i32) -> (i32, i32, i32) {
    %c0_i32 = arith.constant 0 : i32
    %c0_i32_0 = arith.constant 0 : i32
    %c0_i32_1 = arith.constant 0 : i32
    return %arg0, %c0_i32, %c0_i32_0 : i32, i32, i32
  }
}

</mosaic_0001>

<bundles_post_ra>
// kernel: tpu_custom_call.1
= control target key start
LH: loop header
LB: loop body
LE: loop exit
PB: predicated region body
PF: predicated region fallthrough
CT: control target
= control target key end

     0   :  { %14 = vsyncpa [#allocation3], 0  ;;  %s2147_s0 = inlined_call_operand.hbm [shape: f32[2,16,128], index: 0, kind: input, shape index: {}]   ;;  %s2148_s1 = inlined_call_operand.hbm [shape: f32[25,128], index: 1, kind: input, shape index: {}]   ;;  %s2149_s2 = inlined_call_operand.vmem [shape: f32[1,128], index: 2, kind: input, shape index: {}]   ;;  %s2150_s3 = inlined_call_operand.vmem [shape: f32[7,128], index: 3, kind: input, shape index: {}]   ;;  %s2151_s4 = inlined_call_operand.vmem [shape: f32[1,128], index: 4, kind: input, shape index: {}]   ;;  %s2152_s5 = inlined_call_operand.vmem [shape: f32[7,128], index: 5, kind: input, shape index: {}]   ;;  %s2153_s6 = inlined_call_operand.vmem [shape: f32[1,128], index: 6, kind: input, shape index: {}]   ;;  %s2154_s7 = inlined_call_operand.hbm [shape: f32[128,128], index: 7, kind: input, shape index: {}]   ;;  %s2155_s8 = inlined_call_operand.vmem [shape: f32[1,128], index: 8, kind: input, shape index: {}]   ;;  %s2156_s9 = inlined_call_operand.hbm [shape: f32[2,16,128], index: 9, kind: output, shape index: {}]  }
   0x1   :  { %16 = vsyncpa [#allocation3 + $0x1], 0 }
   0x2   :  { %17 = vsyncpa [#allocation6], 0 }
   0x3   :  { %18 = vsyncpa [#allocation4], 0 }
   0x4   :  { %20 = vsyncpa [#allocation4 + $0x1], 0  ;;  %s1587_s30 = smov 0   ;;  %s1589_s10 = smov 0  }
   0x5   :  { %s1591_s11 = smov 0   ;;  %s1593_s12 = smov 0  }
   0x6 LB: > { %s1608_s13 = sadd.s32 4294967295, %s1522_s12   ;;  %s1180_s14 = sadd.s32 4294967294, %s1522_s12   ;;  %s1522_s12 = sphi %s1593_s12, %s2183_s12   ;;  %s1518_s11 = sphi %s1591_s11, %s2182_s11   ;;  %s1514_s10 = sphi %s1589_s10, %s2181_s10   ;;  %s1510_s30 = sphi %s1587_s30, %s2180_s30  }
   0x7   : > { %p46_p0 = scmp.ne.s32.totalorder %s1514_s10, %s1510_s30  ;;  %p2157_p1 = scmp.eq.s32.totalorder %s1608_s13, 0 }
   0x8   : > { %p244_p3 = scmp.eq.s32.totalorder %s1180_s14, 1  ;;  %p1181_p5 = scmp.ge.s32.totalorder %s1522_s12, 1 }
   0x9   : > { %p1617_p4 = por %p2157_p1, %p46_p0  ;;  %p251_p7 = scmp.lt.s32.totalorder %s1522_s12, 3 }
   0xa   : > { %p1622_p6 = por %p244_p3, %p46_p0  ;;  %s1524_s18 = smov [#allocation5]  }
   0xb   : > { %s2163_s15 = scalar_select %p1617_p4, 1, 0 }
   0xc   : > { %s2164_s16 = scalar_select %p1622_p6, 1, 0 }
   0xd   : > { %p1627_p8 = pnand %p1181_p5, %p251_p7  ;;  %s263_s19 = sshll.u32 %s1524_s18, 4  ;;  %s1631_s19 = int_to_ptr.vmem [resolvable:$true] %s263_s19 }
   0xe   : > { %2165 = sst [smem:[#allocation12_spill]] %s2164_s16  ;;  %s1525_s21 = smov [#allocation7]  }
   0xf   : > { %p1302_p9 = pneg %p1627_p8  ;;  %s291_s22 = sshll.u32 %s1525_s21, 4  ;;  %s1642_s22 = int_to_ptr.vmem [resolvable:$true] %s291_s22 }
  0x10   : > { %s1366_s25 = scalar_lea.hbm %s2148_s1, 512 }
  0x11   : > { %p1638_p11 = pnand %p1302_p9, %p2157_p1  ;;  %p1367_p12 = scmp.ne.s32.totalorder %s2148_s1, %s1366_s25 }
  0x12   : > { %p1373_p5 = scmp.lt.u32.totalorder %s1366_s25, %s2148_s1 }
  0x13   : > { %p1368_p13 = pneg %p1638_p11 }
  0x15   : > { %p1369_p0 = pnand %p1368_p13, %p1367_p12 }
  0x17   : > { %p1370_p3 = pneg %p1369_p0 }
  0x19   : > { %p1375_p7 = pnand %p1373_p5, %p1370_p3 }
  0x1b   : > { %1378 = shalt.err (!%p1375_p7)
}
  0x1c   : > { %s1379_s14 = scalar_lea.vmem %s1631_s19, 512  ;;  %p1387_p2 = scmp.lt.s32.totalorder %s1631_s19, %s1631_s19 }
  0x1d   : > { %p1380_p9 = scmp.ne.s32.totalorder %s1631_s19, %s1379_s14  ;;  %p1388_p12 = scmp.lt.s32.totalorder %s1379_s14, %s1379_s14 }
  0x1f   : > { %p1382_p10 = pnand %p1380_p9, %p1368_p13  ;;  %p1389_p0 = por %p1388_p12, %p1387_p2 }
  0x21   : > { %p1383_p1 = pneg %p1382_p10 }
  0x23   : > { %p1390_p6 = pnand %p1389_p0, %p1383_p1 }
  0x25   : > { %1393 = shalt.err (!%p1390_p6)
}
  0x26   : > { %s2159_s18 = smov 128   ;;  %s2160_s21 = smov 8  }
  0x27   : > { %1305 = dma.hbm_to_vmem [thread:$0]  (!%p1638_p11), %s2148_s1, 512, %s1631_s19, [#allocation6], %s2159_s18, %s2159_s18, %s2160_s21  }
  0x28   : > { %s1394_s27 = scalar_lea.hbm %s2154_s7, 2048 }
  0x29   : > { %p1395_p1 = scmp.ne.s32.totalorder %s2154_s7, %s1394_s27  ;;  %p1401_p10 = scmp.lt.u32.totalorder %s1394_s27, %s2154_s7 }
  0x2b   : > { %p1397_p2 = pnand %p1395_p1, %p1368_p13 }
  0x2d   : > { %p1398_p6 = pneg %p1397_p2 }
  0x2f   : > { %p1403_p3 = pnand %p1401_p10, %p1398_p6 }
  0x31   : > { %1406 = shalt.err (!%p1403_p3)
}
  0x32   : > { %s1407_s19 = scalar_lea.vmem %s1642_s22, 2048  ;;  %p1415_p12 = scmp.lt.s32.totalorder %s1642_s22, %s1642_s22 }
  0x33   : > { %p1408_p5 = scmp.ne.s32.totalorder %s1642_s22, %s1407_s19  ;;  %p1416_p0 = scmp.lt.s32.totalorder %s1407_s19, %s1407_s19 }
  0x35   : > { %p1410_p7 = pnand %p1408_p5, %p1368_p13  ;;  %p1417_p1 = por %p1416_p0, %p1415_p12 }
  0x37   : > { %p1411_p9 = pneg %p1410_p7 }
  0x39   : > { %p1418_p2 = pnand %p1417_p1, %p1411_p9 }
  0x3b   : > { %1421 = shalt.err (!%p1418_p2)
}
  0x3c   : > { %1308 = dma.hbm_to_vmem [thread:$0]  (!%p1638_p11), %s2154_s7, 2048, %s1642_s22, [#allocation6], %s2159_s18, %s2159_s18, %s2160_s21  }
  0x3d   : > { %s1703_s20 = sadd.s32 1, %s1522_s12   ;;  %s33_s24 = sadd.s32 1, %s1518_s11 }
  0x3e   : > { %s30_s25 = ssub.s32 %s1522_s12, %s1703_s20  ;;  %p40_p13 = scmp.ne.s32.totalorder %s1518_s11, %s1514_s10 }
  0x3f   : > { %p31_p6 = scmp.eq.s32.totalorder %s30_s25, 0  ;;  %p41_p10 = scmp.eq.s32.totalorder %s1522_s12, 0 }
  0x40   : > { %p2168_p3 = scmp.eq.s32.totalorder %s1608_s13, 1  ;;  %p1319_p7 = scmp.lt.s32.totalorder %s1522_s12, 2 }
  0x41   : > { %s1719_s27 = scalar_select %p31_p6, %s1518_s11, %s33_s24  }
  0x42   : > { %p1713_p5 = por %p2168_p3, %p40_p13  ;;  %p42_p9 = por %p41_p10, %p40_p13 }
  0x43   : > { %s308_s28 = sand.u32 1, %s1518_s11   ;;  %s1203_s22 = sshll.u32 %s1522_s12, 8 }
  0x44   : > { %s2169_s26 = scalar_select %p1713_p5, 1, 0 }
  0x45   : > { %s1185_s29 = sshll.u32 %s308_s28, 4  ;;  %s1726_s16 = scalar_lea.hbm %s2147_s0, %s1203_s22 }
  0x46   : > { %s312_s23 = scalar_lea.vmem [#allocation2], %s1185_s29  ;;  %p1730_p11 = pnand %p1319_p7, %p42_p9 }
  0x47   : > { %s319_s25 = sshll.u32 %s312_s23, 4  ;;  %s1734_s18 = scalar_lea.sflag [#allocation3], %s308_s28  ;;  %s1728_s25 = int_to_ptr.vmem [resolvable:$true] %s319_s25 }
  0x48   : > { %s1422_s21 = scalar_lea.hbm %s1726_s16, 256  ;;  %p1424_p0 = pneg %p1730_p11 }
  0x49   : > { %p1423_p12 = scmp.ne.s32.totalorder %s1726_s16, %s1422_s21  ;;  %s1427_s14 = scalar_lea.hbm %s2147_s0, 512 }
  0x4a   : > { %p1428_p13 = scmp.lt.u32.totalorder %s1726_s16, %s2147_s0  ;;  %p1429_p6 = scmp.lt.u32.totalorder %s1427_s14, %s1422_s21 }
  0x4b   : > { %p1425_p1 = pnand %p1424_p0, %p1423_p12  ;;  %p1431_p3 = scmp.lt.u32.totalorder %s1422_s21, %s1726_s16 }
  0x4c   : > { %p1430_p10 = por %p1429_p6, %p1428_p13 }
  0x4d   : > { %p1426_p2 = pneg %p1425_p1 }
  0x4e   : > { %p1432_p7 = por %p1431_p3, %p1430_p10 }
  0x50   : > { %p1433_p9 = pnand %p1432_p7, %p1426_p2 }
  0x52   : > { %1436 = shalt.err (!%p1433_p9)
}
  0x53   : > { %s1437_s28 = scalar_lea.vmem %s1728_s25, 256  ;;  %s1528_s29 = smov [#allocation2]  }
  0x54   : > { %p1438_p12 = scmp.ne.s32.totalorder %s1728_s25, %s1437_s28  ;;  %s1442_s22 = sshll.u32 %s1528_s29, 4  ;;  %s1443_s22 = int_to_ptr.vmem [resolvable:$false] %s1442_s22 }
  0x55   : > { %s1444_s19 = scalar_lea.vmem %s1443_s22, 512  ;;  %p1445_p4 = scmp.lt.s32.totalorder %s1728_s25, %s1443_s22 }
  0x56   : > { %p1440_p1 = pnand %p1438_p12, %p1424_p0  ;;  %p1446_p13 = scmp.lt.s32.totalorder %s1444_s19, %s1437_s28 }
  0x58   : > { %p1441_p5 = pneg %p1440_p1  ;;  %p1447_p6 = por %p1446_p13, %p1445_p4 }
  0x5a   : > { %p1448_p10 = pnand %p1447_p6, %p1441_p5 }
  0x5c   : > { %1451 = shalt.err (!%p1448_p10)
}
  0x5d   : > { %s2171_s21 = smov 8   ;;  %s2172_s14 = smov 128  }
  0x5e   : > { %1312 = dma.hbm_to_vmem [thread:$0]  (!%p1730_p11), %s1726_s16, 256, %s1728_s25, %s1734_s18, %s2172_s14, %s2172_s14, %s2171_s21  }
  0x5f   : > { %331 = sbr.rel (%p1627_p8) target bundleno = 703 (0x2bf), region = 56  ;;  %s1768_s23 = sand.u32 (!%p1627_p8), 1, %s1514_s10  }
  0x60   : > { %s1189_s28 = sshll.u32 (!%p1627_p8), %s1768_s23, 4  ;;  %s334_s29 = scalar_lea.sflag (!%p1627_p8), [#allocation3], %s1768_s23 }
  0x61   : > { %s337_s24 = scalar_lea.vmem (!%p1627_p8), [#allocation2], %s1189_s28  ;;  %p2173_p4 = scmp.ne.s32.totalorder (!%p1627_p8), %s2163_s15, 0 }
  0x66   : > { %1497 = dma.done.wait (%p2173_p4), %s334_s29, 256  }
  0x67   : > { %1499 = vsyncadd (%p2173_p4), %s334_s29, 4294967040  ;;  %p2174_p5 = scmp.eq.s32.totalorder %s1608_s13, 0 }
  0x69   : > { %1501 = dma.done.wait (%p2174_p5), [#allocation6], 2560   ;;  %p2175_p8 = pmov %p2174_p5 }
  0x6a   : > { %v382_v0 = vlaneseq  ;;  %v1787_v3 = vld [vmem:[%s337_s24] sm:$0xff]  ;;  %v1789_v4 = vld [vmem:[%s337_s24 + $0x8] sm:$0xff]  ;;  %s1529_s15 = smov 8   ;;  %s1530_s17 = smov 16  }
  0x6b   : > { %1503 = vsyncadd (%p2175_p8), [#allocation6], 4294964736  ;;  %v389_v5 = vrot.slane %v1787_v3, 6  ;;  %v390_v6 = vrot.slane %v1789_v4, 6  ;;  %s1531_s18 = smov 120   ;;  %v464_v10 = vrot.slane %v1787_v3, 7 }
  0x6c   : > { %v1782_v1 = vshrl.u32 %v382_v0, 7  ;;  %v465_v11 = vrot.slane %v1789_v4, 7  ;;  %s1532_s16 = smov 112   ;;  %v595_v17 = vrot.slane %v1787_v3, 1  ;;  %v596_v18 = vrot.slane %v1789_v4, 1  ;;  %v385_v31 = vld [vmem:[#allocation5] sm:$0xff] }
  0x6d   : > { %v670_v23 = vrot.slane %v1787_v3, 2  ;;  %v671_v24 = vrot.slane %v1789_v4, 2  ;;  %s1533_s19 = smov 24   ;;  %s1534_s21 = smov 104  }
  0x6e   : > { %v1785_v2 = vadd.s32 4294967294, %v1782_v1  ;;  %vm391_vm0 = vcmp.lt.s32.totalorder %v1782_v1, 2  ;;  %v1816_v12 = vadd.s32 4294967295, %v1782_v1  ;;  %vm466_vm2 = vcmp.lt.s32.totalorder %v1782_v1, 1  ;;  %s379_s14 = scalar_lea.vmem [#allocation8], %s1189_s28  ;;  %s1204_s24 = sshll.u32 %s1608_s13, 8 }
  0x6f   : > { %v1797_v7 = vsel %vm391_vm0, %v389_v5, %v390_v6  ;;  %v393_v8 = vsel %vm391_vm0, %v390_v6, %v389_v5  ;;  %v468_v13 = vsel %vm466_vm2, %v465_v11, %v464_v10  ;;  %v1832_v14 = vsel %vm466_vm2, %v464_v10, %v465_v11  ;;  %s1088_s29 = sshll.u32 %s379_s14, 4  ;;  %s1075_s28 = scalar_lea.sflag [#allocation4], %s1768_s23  ;;  %s2096_s29 = int_to_ptr.vmem [resolvable:$true] %s1088_s29 }
  0x70   : > { %vm396_vm1 = vcmp.ge.s32.totalorder %v1785_v2, 0  ;;  %422 = vrot.lane.b32.xlu1 %v1797_v7, %s1529_s15  ;;  %410 = vrot.lane.b32.xlu0 %v1797_v7, %s1530_s17  ;;  %vm471_vm3 = vcmp.ge.s32.totalorder %v1816_v12, 0  ;;  %v1859_v16 = vadd.s32 8, %v1782_v1  ;;  %vm597_vm4 = vcmp.lt.s32.totalorder %v1782_v1, 7  ;;  %s1452_s25 = scalar_lea.vmem %s2096_s29, 256  ;;  %p2176_p0 = scmp.ne.s32.totalorder %s2169_s26, 0 }
  0x71   : > { %v1807_v9 = vsel %vm396_vm1, %v393_v8, 0.0  ;;  %v1836_v15 = vsel %vm471_vm3, %v468_v13, 0.0  ;;  %v599_v20 = vsel %vm597_vm4, %v596_v18, %v595_v17  ;;  %v1888_v22 = vsel %vm597_vm4, %v595_v17, %v596_v18  ;;  %p1453_p11 = scmp.ne.s32.totalorder %s2096_s29, %s1452_s25  ;;  %s1535_s13 = smov [#allocation8]  }
  0x72   : > { %v1868_v19 = vadd.s32 1, %v1859_v16  ;;  %v1901_v25 = vadd.s32 2, %v1859_v16  ;;  %vm672_vm6 = vcmp.lt.s32.totalorder %v1782_v1, 6  ;;  %v1940_v29 = vsub.s32 1, %v1782_v1  ;;  %s1456_s22 = sshll.u32 %s1535_s13, 4  ;;  %s1457_s22 = int_to_ptr.vmem [resolvable:$false] %s1456_s22 }
  0x73   : > { %v674_v26 = vsel %vm672_vm6, %v671_v24, %v670_v23  ;;  %v1921_v28 = vsel %vm672_vm6, %v670_v23, %v671_v24  ;;  %v1943_v30 = vsub.s32 0, %v1782_v1  ;;  %v1948_v36 = vsub.s32 2, %v1782_v1  ;;  %p1454_p2 = pnand %p1453_p11, %p2176_p0  ;;  %p1459_p7 = scmp.lt.s32.totalorder %s2096_s29, %s1457_s22 }
  0x74   : > { %442 = vrot.lane.b32.xlu1 %v1797_v7, %s1531_s18  ;;  %408 = vrot.lane.b32.xlu0 %v1807_v9, %s1530_s17  ;;  %vm605_vm5 = vcmp.lt.s32.totalorder %v1868_v19, 16  ;;  %vm680_vm7 = vcmp.lt.s32.totalorder %v1901_v25, 16  ;;  %v427_v34 = vrot.slane %v385_v31, %v1940_v29  ;;  %v1952_v42 = vsub.s32 3, %v1782_v1  ;;  %v1196_v25 = vld [vmem:[%s2153_s6] ss:$0 sm:$0xff] }
  0x75   : > { %v1884_v21 = vsel %vm605_vm5, %v599_v20, 0.0  ;;  %v1917_v27 = vsel %vm680_vm7, %v674_v26, 0.0  ;;  %v415_v35 = vrot.slane %v385_v31, %v1943_v30  ;;  %v435_v41 = vrot.slane %v385_v31, %v1948_v36  ;;  %p1455_p3 = pneg %p1454_p2 }
  0x76   : > { %v1955_v43 = vsub.s32 4, %v1782_v1  ;;  %v1958_v46 = vsub.s32 5, %v1782_v1  ;;  %v447_v48 = vrot.slane %v385_v31, %v1952_v42  ;;  %v1966_v55 = vsub.s32 6, %v1782_v1 }
  0x77   : > { %v437_v49 = vmul.f32 %v435_v41, %v1797_v7  ;;  %v436_v51 = vmul.f32 %v435_v41, %v1807_v9  ;;  %v1969_v56 = vsub.s32 7, %v1782_v1  ;;  %vm847_vm8 = vcmp.lt.s32.totalorder %v1782_v1, 3 }
  0x78   : > { %454 = vrot.lane.b32.xlu1 %v1797_v7, %s1532_s16  ;;  %440 = vrot.lane.b32.xlu0 %v1807_v9, %s1531_s18  ;;  %v459_v50 = vrot.slane %v385_v31, %v1955_v43  ;;  %v490_v54 = vrot.slane %v385_v31, %v1958_v46  ;;  %v502_v5 = vrot.slane %v385_v31, %v1966_v55  ;;  %vm938_vm10 = vcmp.lt.s32.totalorder %v1782_v1, 5 }
  0x79   : > { %v510_v6 = vrot.slane %v385_v31, %v1969_v56 }
  0x7b   : > { %v512_v23 = vmul.f32 %v510_v6, %v1832_v14  ;;  %v511_v31 = vmul.f32 %v510_v6, %v1836_v15 }
  0x7c   : > { %420 = vrot.lane.b32.xlu1 %v1807_v9, %s1529_s15  ;;  %452 = vrot.lane.b32.xlu0 %v1807_v9, %s1532_s16 }
  0x80   : > { %485 = vrot.lane.b32.xlu1 %v1832_v14, %s1530_s17  ;;  %483 = vrot.lane.b32.xlu0 %v1836_v15, %s1530_s17 }
  0x84   : > { %497 = vrot.lane.b32.xlu1 %v1832_v14, %s1529_s15  ;;  %495 = vrot.lane.b32.xlu0 %v1836_v15, %s1529_s15 }
  0x88   : > { %517 = vrot.lane.b32.xlu1 %v1832_v14, %s1531_s18  ;;  %515 = vrot.lane.b32.xlu0 %v1836_v15, %s1531_s18 }
  0x8c   : > { %529 = vrot.lane.b32.xlu1 %v1832_v14, %s1532_s16  ;;  %527 = vrot.lane.b32.xlu0 %v1836_v15, %s1532_s16 }
  0x90   : > { %541 = vrot.lane.b32.xlu1 %v1789_v4, %s1530_s17  ;;  %539 = vrot.lane.b32.xlu0 %v1787_v3, %s1530_s17 }
  0x94   : > { %553 = vrot.lane.b32.xlu1 %v1789_v4, %s1529_s15  ;;  %551 = vrot.lane.b32.xlu0 %v1787_v3, %s1529_s15 }
  0x98   : > { %573 = vrot.lane.b32.xlu1 %v1789_v4, %s1531_s18  ;;  %571 = vrot.lane.b32.xlu0 %v1787_v3, %s1531_s18 }
  0x9c   : > { %585 = vrot.lane.b32.xlu1 %v1789_v4, %s1532_s16  ;;  %583 = vrot.lane.b32.xlu0 %v1787_v3, %s1532_s16 }
  0xa0   : > { %616 = vrot.lane.b32.xlu1 %v1884_v21, %s1530_s17  ;;  %614 = vrot.lane.b32.xlu0 %v1888_v22, %s1530_s17 }
  0xa4   : > { %628 = vrot.lane.b32.xlu1 %v1884_v21, %s1529_s15  ;;  %626 = vrot.lane.b32.xlu0 %v1888_v22, %s1529_s15 }
  0xa8   : > { %648 = vrot.lane.b32.xlu1 %v1884_v21, %s1531_s18  ;;  %646 = vrot.lane.b32.xlu0 %v1888_v22, %s1531_s18 }
  0xac   : > { %660 = vrot.lane.b32.xlu1 %v1884_v21, %s1532_s16  ;;  %658 = vrot.lane.b32.xlu0 %v1888_v22, %s1532_s16 }
  0xb0   : > { %691 = vrot.lane.b32.xlu1 %v1917_v27, %s1530_s17  ;;  %689 = vrot.lane.b32.xlu0 %v1921_v28, %s1530_s17 }
  0xb4   : > { %703 = vrot.lane.b32.xlu1 %v1917_v27, %s1529_s15  ;;  %701 = vrot.lane.b32.xlu0 %v1921_v28, %s1529_s15 }
  0xb8   : > { %723 = vrot.lane.b32.xlu1 %v1917_v27, %s1531_s18  ;;  %721 = vrot.lane.b32.xlu0 %v1921_v28, %s1531_s18 }
  0xbc   : > { %735 = vrot.lane.b32.xlu1 %v1917_v27, %s1532_s16  ;;  %733 = vrot.lane.b32.xlu0 %v1921_v28, %s1532_s16 }
  0xe2   : > { %v423_v32 = vpop.permute.xlu1 %422  ;;  %v411_v33 = vpop.permute.xlu0 %410 }
  0xe3   : > { %v429_v39 = vmul.f32 %v427_v34, %v423_v32  ;;  %v417_v40 = vmul.f32 %v415_v35, %v411_v33 }
  0xe5   : > { %v431_v47 = vadd.f32 %v429_v39, %v417_v40 }
  0xe6   : > { %v443_v37 = vpop.permute.xlu1 %442  ;;  %v409_v38 = vpop.permute.xlu0 %408 }
  0xe7   : > { %v439_v57 = vadd.f32 %v437_v49, %v431_v47  ;;  %v449_v58 = vmul.f32 %v447_v48, %v443_v37  ;;  %v416_v59 = vmul.f32 %v415_v35, %v409_v38  ;;  %v386_v38 = vld [vmem:[#allocation5 + $0x8] sm:$0xff] }
  0xe8   : > { %v534_v14 = vrot.slane %v386_v38, %v1940_v29 }
  0xe9   : > { %v451_v7 = vadd.f32 %v449_v58, %v439_v57 }
  0xea   : > { %v455_v44 = vpop.permute.xlu1 %454  ;;  %v441_v45 = vpop.permute.xlu0 %440 }
  0xeb   : > { %v461_v61 = vmul.f32 %v459_v50, %v455_v44  ;;  %v448_v8 = vmul.f32 %v447_v48, %v441_v45  ;;  %v522_v45 = vrot.slane %v386_v38, %v1943_v30 }
  0xed   : > { %v463_v11 = vadd.f32 %v461_v61, %v451_v7 }
  0xee   : > { %v421_v52 = vpop.permute.xlu1 %420  ;;  %v453_v53 = vpop.permute.xlu0 %452 }
  0xef   : > { %v428_v60 = vmul.f32 %v427_v34, %v421_v52  ;;  %v460_v17 = vmul.f32 %v459_v50, %v453_v53  ;;  %v546_v52 = vrot.slane %v386_v38, %v1948_v36 }
  0xf1   : > { %v430_v62 = vadd.f32 %v428_v60, %v416_v59  ;;  %v558_v59 = vrot.slane %v386_v38, %v1952_v42 }
  0xf2   : > { %v486_v63 = vpop.permute.xlu1 %485  ;;  %v484_v0 = vpop.permute.xlu0 %483 }
  0xf3   : > { %v438_v9 = vadd.f32 %v436_v51, %v430_v62  ;;  %v492_v10 = vmul.f32 %v490_v54, %v486_v63  ;;  %v491_v32 = vmul.f32 %v490_v54, %v484_v0 }
  0xf5   : > { %v450_v13 = vadd.f32 %v448_v8, %v438_v9  ;;  %v494_v26 = vadd.f32 %v492_v10, %v463_v11 }
  0xf6   : > { %v498_v18 = vpop.permute.xlu1 %497  ;;  %v496_v20 = vpop.permute.xlu0 %495 }
  0xf7   : > { %v462_v24 = vadd.f32 %v460_v17, %v450_v13  ;;  %v504_v33 = vmul.f32 %v502_v5, %v498_v18  ;;  %v503_v37 = vmul.f32 %v502_v5, %v496_v20  ;;  %v566_v5 = vrot.slane %v386_v38, %v1955_v43 }
  0xf9   : > { %v493_v34 = vadd.f32 %v491_v32, %v462_v24  ;;  %v506_v35 = vadd.f32 %v504_v33, %v494_v26  ;;  %v568_v13 = vmul.f32 %v566_v5, %v1789_v4  ;;  %v578_v24 = vrot.slane %v386_v38, %v1958_v46 }
  0xfa   : > { %v518_v39 = vpop.permute.xlu1 %517  ;;  %v516_v40 = vpop.permute.xlu0 %515  ;;  %v567_v26 = vmul.f32 %v566_v5, %v1787_v3  ;;  %v590_v32 = vrot.slane %v386_v38, %v1966_v55 }
  0xfb   : > { %v505_v41 = vadd.f32 %v503_v37, %v493_v34  ;;  %v514_v44 = vadd.f32 %v512_v23, %v506_v35  ;;  %v524_v50 = vmul.f32 %v522_v45, %v518_v39  ;;  %v523_v51 = vmul.f32 %v522_v45, %v516_v40 }
  0xfc   : > { %v621_v35 = vrot.slane %v386_v38, %v1969_v56 }
  0xfd   : > { %v513_v47 = vadd.f32 %v511_v31, %v505_v41  ;;  %v526_v60 = vadd.f32 %v524_v50, %v514_v44  ;;  %v387_v41 = vld [vmem:[#allocation5 + $0x10] sm:$0xff] }
  0xfe   : > { %v530_v48 = vpop.permute.xlu1 %529  ;;  %v528_v49 = vpop.permute.xlu0 %527 }
  0xff   : > { %v525_v57 = vadd.f32 %v523_v51, %v513_v47  ;;  %v536_v15 = vmul.f32 %v534_v14, %v530_v48  ;;  %v535_v58 = vmul.f32 %v534_v14, %v528_v49  ;;  %v633_v49 = vrot.slane %v387_v41, %v1943_v30 }
 0x100   : > { %v641_v14 = vrot.slane %v387_v41, %v1940_v29 }
 0x101   : > { %v538_v6 = vadd.f32 %v536_v15, %v526_v60  ;;  %v537_v7 = vadd.f32 %v535_v58, %v525_v57 }
 0x102   : > { %v542_v53 = vpop.permute.xlu1 %541  ;;  %v540_v54 = vpop.permute.xlu0 %539  ;;  %v643_v58 = vmul.f32 %v641_v14, %v1884_v21 }
 0x103   : > { %v548_v61 = vmul.f32 %v546_v52, %v542_v53  ;;  %v547_v62 = vmul.f32 %v546_v52, %v540_v54 }
 0x105   : > { %v550_v10 = vadd.f32 %v548_v61, %v538_v6  ;;  %v549_v11 = vadd.f32 %v547_v62, %v537_v7 }
 0x106   : > { %v554_v63 = vpop.permute.xlu1 %553  ;;  %v552_v0 = vpop.permute.xlu0 %551 }
 0x107   : > { %v560_v8 = vmul.f32 %v558_v59, %v554_v63  ;;  %v559_v9 = vmul.f32 %v558_v59, %v552_v0  ;;  %v642_v59 = vmul.f32 %v641_v14, %v1888_v22  ;;  %v696_v22 = vrot.slane %v387_v41, %v1955_v43 }
 0x109   : > { %v562_v20 = vadd.f32 %v560_v8, %v550_v10  ;;  %v561_v23 = vadd.f32 %v559_v9, %v549_v11  ;;  %v653_v8 = vrot.slane %v387_v41, %v1948_v36  ;;  %v665_v11 = vrot.slane %v387_v41, %v1952_v42 }
 0x10a   : > { %v574_v17 = vpop.permute.xlu1 %573  ;;  %v572_v18 = vpop.permute.xlu0 %571 }
 0x10b   : > { %v570_v37 = vadd.f32 %v568_v13, %v562_v20  ;;  %v580_v31 = vmul.f32 %v578_v24, %v574_v17  ;;  %v569_v39 = vadd.f32 %v567_v26, %v561_v23  ;;  %v579_v40 = vmul.f32 %v578_v24, %v572_v18 }
 0x10d   : > { %v582_v50 = vadd.f32 %v580_v31, %v570_v37  ;;  %v581_v51 = vadd.f32 %v579_v40, %v569_v39 }
 0x10e   : > { %v586_v33 = vpop.permute.xlu1 %585  ;;  %v584_v34 = vpop.permute.xlu0 %583 }
 0x10f   : > { %v592_v44 = vmul.f32 %v590_v32, %v586_v33  ;;  %v591_v45 = vmul.f32 %v590_v32, %v584_v34  ;;  %v708_v32 = vrot.slane %v387_v41, %v1958_v46  ;;  %v716_v33 = vrot.slane %v387_v41, %v1966_v55 }
 0x111   : > { %v594_v54 = vadd.f32 %v592_v44, %v582_v50  ;;  %v593_v57 = vadd.f32 %v591_v45, %v581_v51 }
 0x112   : > { %v617_v47 = vpop.permute.xlu1 %616  ;;  %v615_v48 = vpop.permute.xlu0 %614 }
 0x113   : > { %v623_v52 = vmul.f32 %v621_v35, %v617_v47  ;;  %v622_v53 = vmul.f32 %v621_v35, %v615_v48  ;;  %v718_v47 = vmul.f32 %v716_v33, %v1917_v27  ;;  %v728_v48 = vrot.slane %v387_v41, %v1969_v56 }
 0x115   : > { %v625_v60 = vadd.f32 %v623_v52, %v594_v54  ;;  %v624_v61 = vadd.f32 %v622_v53, %v593_v57 }
 0x116   : > { %v629_v38 = vpop.permute.xlu1 %628  ;;  %v627_v15 = vpop.permute.xlu0 %626 }
 0x117   : > { %v635_v62 = vmul.f32 %v633_v49, %v629_v38  ;;  %v634_v63 = vmul.f32 %v633_v49, %v627_v15  ;;  %v717_v49 = vmul.f32 %v716_v33, %v1921_v28  ;;  %v1194_v28 = vld [vmem:[%s2149_s2] ss:$0 sm:$0xff]  ;;  %v981_v33 = vld [vmem:[#allocation7 + $0x48] sm:$0xff] }
 0x119   : > { %v637_v0 = vadd.f32 %v635_v62, %v625_v60  ;;  %v636_v5 = vadd.f32 %v634_v63, %v624_v61  ;;  %v1193_v61 = vld [vmem:[#allocation5 + $0x18] ss:$0 sm:$0xff] }
 0x11a   : > { %v649_v6 = vpop.permute.xlu1 %648  ;;  %v647_v7 = vpop.permute.xlu0 %646 }
 0x11b   : > { %v645_v9 = vadd.f32 %v643_v58, %v637_v0  ;;  %v644_v10 = vadd.f32 %v642_v59, %v636_v5  ;;  %v655_v18 = vmul.f32 %v653_v8, %v649_v6  ;;  %v654_v21 = vmul.f32 %v653_v8, %v647_v7 }
 0x11d   : > { %v657_v34 = vadd.f32 %v655_v18, %v645_v9  ;;  %v656_v35 = vadd.f32 %v654_v21, %v644_v10  ;;  %v972_v9 = vld [vmem:[#allocation7] sm:$0xff]  ;;  %v973_v10 = vld [vmem:[#allocation7 + $0x8] sm:$0xff] }
 0x11e   : > { %v661_v13 = vpop.permute.xlu1 %660  ;;  %v659_v17 = vpop.permute.xlu0 %658  ;;  %v976_v21 = vld [vmem:[#allocation7 + $0x20] sm:$0xff] }
 0x11f   : > { %v667_v20 = vmul.f32 %v665_v11, %v661_v13  ;;  %v666_v23 = vmul.f32 %v665_v11, %v659_v17  ;;  %v1258_v11 = vpack.c.bf16 %v973_v10, %v972_v9  ;;  %v974_v13 = vld [vmem:[#allocation7 + $0x10] sm:$0xff]  ;;  %v975_v17 = vld [vmem:[#allocation7 + $0x18] sm:$0xff] }
 0x120   : > { %v1262_v18 = vpack.c.bf16 %v975_v17, %v974_v13 }
 0x121   : > { %v669_v39 = vadd.f32 %v667_v20, %v657_v34  ;;  %v668_v40 = vadd.f32 %v666_v23, %v656_v35  ;;  %1259 = vmatprep.subr.bf16.mxu0 %v1258_v11  ;;  %v978_v23 = vld [vmem:[#allocation7 + $0x30] sm:$0xff] }
 0x122   : > { %v692_v24 = vpop.permute.xlu1 %691  ;;  %v690_v26 = vpop.permute.xlu0 %689  ;;  %1261 = vmatpush3.bf16.msra.mxu0 %v1258_v11  ;;  %v982_v35 = vld [vmem:[#allocation7 + $0x50] sm:$0xff] }
 0x123   : > { %v698_v37 = vmul.f32 %v696_v22, %v692_v24  ;;  %v697_v31 = vmul.f32 %v696_v22, %v690_v26  ;;  %1263 = vmatprep.subr.bf16.mxu0 %v1262_v18  ;;  %v977_v22 = vld [vmem:[#allocation7 + $0x28] sm:$0xff]  ;;  %v979_v24 = vld [vmem:[#allocation7 + $0x38] sm:$0xff]  ;;  %v980_v26 = vld [vmem:[#allocation7 + $0x40] sm:$0xff] }
 0x124   : > { %v1266_v20 = vpack.c.bf16 %v977_v22, %v976_v21  ;;  %v1274_v34 = vpack.c.bf16 %v981_v33, %v980_v26 }
 0x125   : > { %v700_v14 = vadd.f32 %v698_v37, %v669_v39  ;;  %v699_v50 = vadd.f32 %v697_v31, %v668_v40  ;;  %v983_v37 = vld [vmem:[#allocation7 + $0x58] sm:$0xff]  ;;  %v984_v39 = vld [vmem:[#allocation7 + $0x60] sm:$0xff]  ;;  %v985_v40 = vld [vmem:[#allocation7 + $0x68] sm:$0xff] }
 0x126   : > { %v704_v44 = vpop.permute.xlu1 %703  ;;  %v702_v45 = vpop.permute.xlu0 %701  ;;  %1265 = vmatpush3.bf16.msra.mxu0 %v1262_v18  ;;  %v1278_v31 = vpack.c.bf16 %v983_v37, %v982_v35 }
 0x127   : > { %v710_v51 = vmul.f32 %v708_v32, %v704_v44  ;;  %v709_v52 = vmul.f32 %v708_v32, %v702_v45  ;;  %1267 = vmatprep.subr.bf16.mxu0 %v1266_v20  ;;  %v1270_v32 = vpack.c.bf16 %v979_v24, %v978_v23  ;;  %v1282_v44 = vpack.c.bf16 %v985_v40, %v984_v39  ;;  %v986_v45 = vld [vmem:[#allocation7 + $0x70] sm:$0xff] }
 0x129   : > { %v712_v53 = vadd.f32 %v710_v51, %v700_v14  ;;  %v711_v54 = vadd.f32 %v709_v52, %v699_v50 }
 0x12a   : > { %v724_v57 = vpop.permute.xlu1 %723  ;;  %v722_v38 = vpop.permute.xlu0 %721  ;;  %1269 = vmatpush3.bf16.msra.mxu0 %v1266_v20 }
 0x12b   : > { %v720_v15 = vadd.f32 %v718_v47, %v712_v53  ;;  %v730_v58 = vmul.f32 %v728_v48, %v724_v57  ;;  %v719_v59 = vadd.f32 %v717_v49, %v711_v54  ;;  %v729_v60 = vmul.f32 %v728_v48, %v722_v38  ;;  %1271 = vmatprep.subr.bf16.mxu0 %v1270_v32  ;;  %v987_v47 = vld [vmem:[#allocation7 + $0x78] sm:$0xff]  ;;  %v754_v49 = vld [vmem:[%s2150_s3] sm:$0x7f] }
 0x12c   : > { %v1286_v48 = vpack.c.bf16 %v987_v47, %v986_v45  ;;  %v774_v51 = vrot.slane %v754_v49, %v1940_v29  ;;  %v762_v52 = vrot.slane %v754_v49, %v1943_v30  ;;  %v818_v13 = vrot.slane %v754_v49, %v1958_v46  ;;  %v1195_v45 = vld [vmem:[%s2151_s4] ss:$0 sm:$0xff] }
 0x12d   : > { %v732_v27 = vadd.f32 %v730_v58, %v720_v15  ;;  %v731_v0 = vadd.f32 %v729_v60, %v719_v59  ;;  %v786_v15 = vrot.slane %v754_v49, %v1948_v36 }
 0x12e   : > { %v736_v62 = vpop.permute.xlu1 %735  ;;  %v734_v63 = vpop.permute.xlu0 %733  ;;  %1273 = vmatpush3.bf16.msra.mxu0 %v1270_v32  ;;  %v830_v32 = vrot.slane %v754_v49, %v1966_v55 }
 0x12f   : > { %v742_v56 = vmul.f32 %v1193_v61, %v736_v62  ;;  %v741_v41 = vmul.f32 %v1193_v61, %v734_v63  ;;  %1275 = vmatprep.subr.bf16.mxu0 %v1274_v34  ;;  %v794_v62 = vrot.slane %v754_v49, %v1952_v42 }
 0x131   : > { %v744_v5 = vadd.f32 %v742_v56, %v732_v27  ;;  %v743_v6 = vadd.f32 %v741_v41, %v731_v0 }
 0x132   : > { %1277 = vmatpush3.bf16.msra.mxu0 %v1274_v34 }
 0x133   : > { %v2000_v7 = vadd.f32 %v1194_v28, %v744_v5  ;;  %v2002_v8 = vadd.f32 %v1194_v28, %v743_v6  ;;  %1279 = vmatprep.subr.bf16.mxu0 %v1278_v31  ;;  %v806_v5 = vrot.slane %v754_v49, %v1955_v43 }
 0x135   : > { %755 = vrot.lane.b32.xlu0 %v2002_v8, %s1533_s19  ;;  %757 = vrot.lane.b32.xlu1 %v2000_v7, %s1533_s19  ;;  %v795_v10 = vmul.f32 %v794_v62, %v2002_v8  ;;  %v796_v11 = vmul.f32 %v794_v62, %v2000_v7  ;;  %s1458_s19 = scalar_lea.vmem %s1457_s22, 512 }
 0x136   : > { %1281 = vmatpush3.bf16.msra.mxu0 %v1278_v31  ;;  %p1460_p9 = scmp.lt.s32.totalorder %s1458_s19, %s1452_s25 }
 0x137   : > { %1283 = vmatprep.subr.bf16.mxu0 %v1282_v44 }
 0x138   : > { %p1461_p12 = por %p1460_p9, %p1459_p7 }
 0x139   : > { %767 = vrot.lane.b32.xlu0 %v2002_v8, %s1530_s17  ;;  %769 = vrot.lane.b32.xlu1 %v2000_v7, %s1530_s17 }
 0x13a   : > { %1285 = vmatpush3.bf16.msra.mxu0 %v1282_v44  ;;  %v844_v44 = vld [vmem:[%s2152_s5] sm:$0x7f]  ;;  %p1462_p1 = pnand %p1461_p12, %p1455_p3 }
 0x13b   : > { %1287 = vmatprep.subr.bf16.mxu0 %v1286_v48  ;;  %v867_v49 = vrot.slane %v844_v44, %v1943_v30  ;;  %v958_v62 = vrot.slane %v844_v44, %v1966_v55 }
 0x13d   : > { %779 = vrot.lane.b32.xlu0 %v2002_v8, %s1529_s15  ;;  %781 = vrot.lane.b32.xlu1 %v2000_v7, %s1529_s15 }
 0x13e   : > { %1289 = vmatpush3.bf16.msra.mxu0 %v1286_v48 }
 0x141   : > { %799 = vrot.lane.b32.xlu0 %v2002_v8, %s1531_s18  ;;  %801 = vrot.lane.b32.xlu1 %v2000_v7, %s1531_s18 }
 0x145   : > { %811 = vrot.lane.b32.xlu0 %v2002_v8, %s1532_s16  ;;  %813 = vrot.lane.b32.xlu1 %v2000_v7, %s1532_s16  ;;  %s2102_s16 = scalar_lea.hbm %s2156_s9, %s1204_s24 }
 0x149   : > { %823 = vrot.lane.b32.xlu0 %v2002_v8, %s1534_s21  ;;  %825 = vrot.lane.b32.xlu1 %v2000_v7, %s1534_s21  ;;  %v850_v8 = vadd.s32 4294967293, %v1782_v1  ;;  %v1197_v1 = vld [vmem:[%s2155_s8] ss:$0 sm:$0xff] }
 0x14b   : > { %vm852_vm9 = vcmp.ge.s32.totalorder %v850_v8, 0 }
 0x1a7   : > { %v756_v14 = vpop.permute.xlu0 %755  ;;  %v758_v50 = vpop.permute.xlu1 %757 }
 0x1a8   : > { %v763_v58 = vmul.f32 %v762_v52, %v756_v14  ;;  %v764_v59 = vmul.f32 %v762_v52, %v758_v50  ;;  %v903_v14 = vrot.slane %v844_v44, %v1952_v42  ;;  %v881_v52 = vrot.slane %v844_v44, %v1940_v29 }
 0x1ab   : > { %v768_v53 = vpop.permute.xlu0 %767  ;;  %v770_v54 = vpop.permute.xlu1 %769 }
 0x1ac   : > { %v775_v57 = vmul.f32 %v774_v51, %v768_v53  ;;  %v776_v38 = vmul.f32 %v774_v51, %v770_v54  ;;  %v895_v53 = vrot.slane %v844_v44, %v1948_v36  ;;  %v917_v54 = vrot.slane %v844_v44, %v1955_v43 }
 0x1ae   : > { %v777_v63 = vadd.f32 %v775_v57, %v763_v58  ;;  %v778_v27 = vadd.f32 %v776_v38, %v764_v59  ;;  %v931_v57 = vrot.slane %v844_v44, %v1958_v46  ;;  %v942_v38 = vadd.s32 3, %v1859_v16 }
 0x1af   : > { %v780_v60 = vpop.permute.xlu0 %779  ;;  %v782_v61 = vpop.permute.xlu1 %781 }
 0x1b0   : > { %v787_v0 = vmul.f32 %v786_v15, %v780_v60  ;;  %v788_v56 = vmul.f32 %v786_v15, %v782_v61  ;;  %vm946_vm11 = vcmp.lt.s32.totalorder %v942_v38, 16 }
 0x1b2   : > { %v789_v41 = vadd.f32 %v787_v0, %v777_v63  ;;  %v790_v28 = vadd.f32 %v788_v56, %v778_v27 }
 0x1b3   : > { %v800_v6 = vpop.permute.xlu0 %799  ;;  %v802_v9 = vpop.permute.xlu1 %801 }
 0x1b4   : > { %v797_v17 = vadd.f32 %v795_v10, %v789_v41  ;;  %v807_v18 = vmul.f32 %v806_v5, %v800_v6  ;;  %v798_v21 = vadd.f32 %v796_v11, %v790_v28  ;;  %v808_v22 = vmul.f32 %v806_v5, %v802_v9 }
 0x1b6   : > { %v809_v33 = vadd.f32 %v807_v18, %v797_v17  ;;  %v810_v34 = vadd.f32 %v808_v22, %v798_v21 }
 0x1b7   : > { %v812_v20 = vpop.permute.xlu0 %811  ;;  %v814_v23 = vpop.permute.xlu1 %813 }
 0x1b8   : > { %v819_v24 = vmul.f32 %v818_v13, %v812_v20  ;;  %v820_v26 = vmul.f32 %v818_v13, %v814_v23 }
 0x1ba   : > { %v821_v31 = vadd.f32 %v819_v24, %v809_v33  ;;  %v822_v7 = vadd.f32 %v820_v26, %v810_v34 }
 0x1bb   : > { %v824_v35 = vpop.permute.xlu0 %823  ;;  %v826_v37 = vpop.permute.xlu1 %825 }
 0x1bc   : > { %v831_v39 = vmul.f32 %v830_v32, %v824_v35  ;;  %v832_v40 = vmul.f32 %v830_v32, %v826_v37 }
 0x1be   : > { %v833_v47 = vadd.f32 %v831_v39, %v821_v31  ;;  %v834_v48 = vadd.f32 %v832_v40, %v822_v7 }
 0x1c0   : > { %v842_v50 = vadd.f32 %v1195_v45, %v833_v47  ;;  %v843_v51 = vadd.f32 %v1195_v45, %v834_v48 }
 0x1c2   : > { %v845_v15 = vrot.slane %v842_v50, 5  ;;  %v846_v58 = vrot.slane %v843_v51, 5  ;;  %v872_v59 = vrot.slane %v842_v50, 6  ;;  %v873_v60 = vrot.slane %v843_v51, 6 }
 0x1c3   : > { %v886_v30 = vrot.slane %v842_v50, 7  ;;  %v887_v42 = vrot.slane %v843_v51, 7  ;;  %v905_v61 = vmul.f32 %v903_v14, %v843_v51  ;;  %v908_v10 = vrot.slane %v842_v50, 1 }
 0x1c4   : > { %v848_v29 = vsel %vm847_vm8, %v845_v15, %v846_v58  ;;  %v849_v36 = vsel %vm847_vm8, %v846_v58, %v845_v15  ;;  %v874_v16 = vsel %vm391_vm0, %v872_v59, %v873_v60  ;;  %v875_v43 = vsel %vm391_vm0, %v873_v60, %v872_v59 }
 0x1c5   : > { %v862_v46 = vsel %vm852_vm9, %v849_v36, 0.0  ;;  %v869_v63 = vmul.f32 %v867_v49, %v848_v29  ;;  %v876_v27 = vsel %vm396_vm1, %v875_v43, 0.0  ;;  %v883_v0 = vmul.f32 %v881_v52, %v874_v16 }
 0x1c6   : > { %v868_v55 = vmul.f32 %v867_v49, %v862_v46  ;;  %v882_v56 = vmul.f32 %v881_v52, %v876_v27  ;;  %v888_v41 = vsel %vm466_vm2, %v886_v30, %v887_v42  ;;  %v889_v28 = vsel %vm466_vm2, %v887_v42, %v886_v30 }
 0x1c7   : > { %v885_v5 = vadd.f32 %v883_v0, %v869_v63  ;;  %v890_v6 = vsel %vm471_vm3, %v889_v28, 0.0  ;;  %v897_v9 = vmul.f32 %v895_v53, %v888_v41  ;;  %v909_v17 = vrot.slane %v843_v51, 1 }
 0x1c8   : > { %v884_v11 = vadd.f32 %v882_v56, %v868_v55  ;;  %v896_v13 = vmul.f32 %v895_v53, %v890_v6  ;;  %v922_v2 = vrot.slane %v842_v50, 2  ;;  %v923_v21 = vrot.slane %v843_v51, 2 }
 0x1c9   : > { %v899_v18 = vadd.f32 %v897_v9, %v885_v5  ;;  %v936_v22 = vrot.slane %v842_v50, 3  ;;  %v937_v20 = vrot.slane %v843_v51, 3  ;;  %v904_v24 = vmul.f32 %v903_v14, %v842_v50 }
 0x1ca   : > { %v898_v23 = vadd.f32 %v896_v13, %v884_v11  ;;  %v910_v26 = vsel %vm597_vm4, %v908_v10, %v909_v17  ;;  %v911_v32 = vsel %vm597_vm4, %v909_v17, %v908_v10  ;;  %v924_v34 = vsel %vm672_vm6, %v922_v2, %v923_v21 }
 0x1cb   : > { %v907_v12 = vadd.f32 %v905_v61, %v899_v18  ;;  %v913_v33 = vsel %vm605_vm5, %v911_v32, 0.0  ;;  %v918_v37 = vmul.f32 %v917_v54, %v910_v26  ;;  %v925_v31 = vsel %vm672_vm6, %v923_v21, %v922_v2 }
 0x1cc   : > { %v906_v35 = vadd.f32 %v904_v24, %v898_v23  ;;  %v919_v8 = vmul.f32 %v917_v54, %v913_v33  ;;  %v927_v7 = vsel %vm680_vm7, %v925_v31, 0.0  ;;  %v932_v39 = vmul.f32 %v931_v57, %v924_v34 }
 0x1cd   : > { %v939_v40 = vsel %vm938_vm10, %v936_v22, %v937_v20  ;;  %v940_v19 = vsel %vm938_vm10, %v937_v20, %v936_v22  ;;  %v933_v47 = vmul.f32 %v931_v57, %v927_v7 }
 0x1ce   : > { %v920_v44 = vadd.f32 %v918_v37, %v906_v35  ;;  %v921_v45 = vadd.f32 %v919_v8, %v907_v12  ;;  %v954_v48 = vsel %vm946_vm11, %v940_v19, 0.0  ;;  %v959_v50 = vmul.f32 %v958_v62, %v939_v40 }
 0x1cf   : > { %v960_v51 = vmul.f32 %v958_v62, %v954_v48 }
 0x1d0   : > { %v934_v49 = vadd.f32 %v932_v39, %v920_v44  ;;  %v935_v14 = vadd.f32 %v933_v47, %v921_v45 }
 0x1d2   : > { %v961_v52 = vadd.f32 %v959_v50, %v934_v49  ;;  %v962_v53 = vadd.f32 %v960_v51, %v935_v14 }
 0x1d4   : > { %v970_v54 = vadd.f32 %v1196_v25, %v961_v52  ;;  %v971_v38 = vadd.f32 %v1196_v25, %v962_v53 }
 0x1d6   : > { %1255 = vmatprep.mubr.f32.mxu0 %v970_v54 }
 0x1d7   : > { %1256 = vmatmul.mubr.f32.vlgmr.msra.gmra.mrb[0].mxu0 %v971_v38 }
 0x2aa   : > { %v1257_v57 = vpop.f32.mrb[0].mxu0 }
 0x2ab   : > { %v1067_v15 = vadd.f32 %v1257_v57, %v1197_v1  ;;  %v1061_v58 = vpop.f32.mrb[1].mxu0 }
 0x2ac   : > { %v1062_v59 = vadd.f32 %v1197_v1, %v1061_v58 }
 0x2ad   : > { %v1071_v60 = vmul.f32 %v1067_v15, %v1789_v4 }
 0x2ae   : > { %v1070_v30 = vmul.f32 %v1062_v59, %v1787_v3 }
 0x2af   : > { %1073 = vst [vmem:[%s379_s14 + $0x8] sm:$0xff] %v1071_v60 }
 0x2b0   : > { %1072 = vst [vmem:[%s379_s14] sm:$0xff] %v1070_v30 }
 0x2b1   : > { %1465 = shalt.err (!%p1462_p1)
}
 0x2b2   : > { %s1466_s21 = scalar_lea.hbm %s2102_s16, 256  ;;  %s1470_s17 = scalar_lea.hbm %s2156_s9, 512 }
 0x2b3   : > { %p1467_p13 = scmp.ne.s32.totalorder %s2102_s16, %s1466_s21  ;;  %p1471_p4 = scmp.lt.u32.totalorder %s2102_s16, %s2156_s9 }
 0x2b4   : > { %p1472_p5 = scmp.lt.u32.totalorder %s1470_s17, %s1466_s21  ;;  %p1474_p11 = scmp.lt.u32.totalorder %s1466_s21, %s2102_s16 }
 0x2b5   : > { %p1468_p6 = pnand %p1467_p13, %p2176_p0 }
 0x2b6   : > { %p1473_p8 = por %p1472_p5, %p1471_p4 }
 0x2b7   : > { %p1469_p10 = pneg %p1468_p6 }
 0x2b8   : > { %p1475_p2 = por %p1474_p11, %p1473_p8 }
 0x2ba   : > { %p1476_p3 = pnand %p1475_p2, %p1469_p10 }
 0x2bc   : > { %1479 = shalt.err (!%p1476_p3)
}
 0x2bd   : > { %s1536_s25 = smov 128  }
 0x2be   : > { %1300 = dma.vmem_to_hbm [thread:$0]  (%p2176_p0), %s2096_s29, 256, %s2102_s16, %s1075_s28, %s1536_s25, %s1536_s25, %s1529_s15  }
 0x2bf PF: > { %s2177_s22 = sld [smem:[#allocation12_spill]]  ;;  %s1103_s19 = sand.u32 1, %s1510_s30  }
 0x2c0   : > { %p2179_p9 = scmp.ge.s32.totalorder %s1522_s12, 2  ;;  %s1104_s21 = scalar_lea.sflag [#allocation4], %s1103_s19 }
 0x2c5   : > { %p2178_p7 = scmp.ne.s32.totalorder %s2177_s22, 0 }
 0x2c7   : > { %p1314_p12 = pnand %p2179_p9, %p2178_p7 }
 0x2c9   : > { %1505 = dma.done.wait (!%p1314_p12), %s1104_s21, 256  }
 0x2ca   : > { %1507 = vsyncadd (!%p1314_p12), %s1104_s21, 4294967040  ;;  %p23_p1 = scmp.ge.s32.totalorder %s1703_s20, 4   ;;  %s2180_s30 = smov %s1514_s10 }
 0x2cb   : > { %s2181_s10 = smov %s1518_s11  ;;  %s2182_s11 = smov %s1719_s27 }
 0x2cc   : > { %s2183_s12 = smov %s1703_s20  ;;  %25 = sbr.rel (!%p23_p1) target bundleno = 6 (0x6), region = 109 }
 0x2d3   :  { %1109 = vsyncpa [#allocation3], 1 }
 0x2d4   :  { %1111 = vsyncpa [#allocation3 + $0x1], 1 }
 0x2d5   :  { %1112 = vsyncpa [#allocation6], 1 }
 0x2d6   :  { %1113 = vsyncpa [#allocation4], 1 }
 0x2d7   :  { %1115 = vsyncpa [#allocation4 + $0x1], 1 }

</bundles_post_ra>
